<compile_context>
chip_gen: v5e
topology: v5e:2x2
jax: 0.10.0
libtpu: 0.0.40
codegen_flags: <defaults>
</compile_context>

<pallas_src>
import functools

import jax
import jax.numpy as jnp
from jax.experimental import pallas as pl
from jax.experimental.pallas import tpu as pltpu


def _round_up(x, m):
    return (x + m - 1) // m * m


def _default_bf16_act():
    """bf16 VPU/EUP exists from TPU v6 onward; keep f32 activations elsewhere."""
    try:
        kind = jax.devices()[0].device_kind.lower()
    except Exception:  # pragma: no cover - conservative fallback
        return False
    return any(tag in kind for tag in ("v6", "v7", "7x"))


def _choose_tiles(B, N, tile_b, tile_n, n_splits, max_m=8192):
    # Batch tile: multiple of 8, or the full (possibly odd) batch.
    if tile_b is None:
        tile_b = 8 if (B % 8 == 0 or B > 64) else B
    B_pad = _round_up(B, tile_b)
    assert tile_b % 8 == 0 or tile_b == B_pad, "tile_b must be 8-aligned or full batch"

    # Point tile: multiple of 8, capped so M = tile_b*tile_n stays VMEM-friendly.
    cap = min(1024, max(8, (max_m // tile_b) // 8 * 8))
    if tile_n is None:
        n8 = _round_up(max(N, 1), 8)
        k = -(-n8 // cap)                       # number of point tiles
        tile_n = _round_up(-(-n8 // k), 8)
    assert tile_n % 8 == 0 and tile_n > 0, "tile_n must be a positive multiple of 8"
    N_pad = _round_up(N, tile_n)
    nt = N_pad // tile_n

    # Split the point axis across cores when the batch axis alone can't keep
    # both v7x TensorCores busy (harmless elsewhere).
    if n_splits is None:
        n_splits = 2 if (B_pad // tile_b == 1 and nt >= 2 and nt % 2 == 0) else 1
    assert nt % n_splits == 0, "n_splits must divide the number of point tiles"
    return tile_b, B_pad, tile_n, N_pad, n_splits


def _pointnet_medium_kernel(x_ref, w1_ref, b1_ref, w2_ref, b2_ref,
                            w3_ref, b3_ref, w4_ref, b4_ref,
                            o_ref, acc_ref, *, bf16_act):
    """One (split, batch-tile, point-tile) grid step.

    x_ref : (TB, TN, 8)  f32 points, channel dim zero-padded 3->8
    w1_ref: (8, 64)   f32      b1_ref: (1, 64)  f32
    w2_ref: (64, 64)  bf16     b2_ref: (1, 64)  f32
    w3_ref: (64, 128) bf16     b3_ref: (1, 128) f32
    w4_ref: (128,256) bf16     b4_ref: (1, 256) f32
    o_ref : (1, TB, 256) f32   per-(split, batch) max (written on last point tile)
    acc_ref: (TB, 8, 256)      running max, 8 sublane rows per batch
    """
    n = pl.program_id(2)
    n_last = pl.num_programs(2) - 1
    TB, TN, CK = x_ref.shape
    D = o_ref.shape[-1]
    M = TB * TN

    @pl.when(n == 0)
    def _init():
        acc_ref[...] = jnp.full(acc_ref.shape, -jnp.inf, acc_ref.dtype)

    # tanh-GELU: polynomial on the VPU, tanh on the EUP (own VLIW slot).
    if bf16_act:
        act = lambda v: jax.nn.gelu(v.astype(jnp.bfloat16), approximate=True)
    else:
        act = lambda v: jax.nn.gelu(v, approximate=True).astype(jnp.bfloat16)

    # ---- Layer 1: Linear(3 -> 64) on the MXU (K zero-padded to 8, f32 operands).
    x = x_ref[...].reshape(M, CK)                                   # (M, 8) f32
    h = jnp.dot(x, w1_ref[...], preferred_element_type=jnp.float32) + b1_ref[...]
    h = act(h)                                                      # (M, 64) bf16

    # ---- Layer 2: Linear(64 -> 64), bf16 MXU operands, f32 accumulation.
    h = jnp.dot(h, w2_ref[...], preferred_element_type=jnp.float32) + b2_ref[...]
    h = act(h)                                                      # (M, 64) bf16

    # ---- Layer 3: Linear(64 -> 128)
    h = jnp.dot(h, w3_ref[...], preferred_element_type=jnp.float32) + b3_ref[...]
    h = act(h)                                                      # (M, 128) bf16

    # ---- Layer 4: Linear(128 -> 256)
    y = jnp.dot(h, w4_ref[...], preferred_element_type=jnp.float32) + b4_ref[...]
    y = y.astype(acc_ref.dtype)                                     # (M, 256)

    # ---- Per-batch running max over points: fold the point tile to 8 sublane
    # rows per batch with elementwise vmax; cross-sublane reduce is deferred.
    y4 = y.reshape(TB, TN // 8, 8, D)
    acc_ref[...] = jnp.maximum(acc_ref[...], jnp.max(y4, axis=1))

    @pl.when(n == n_last)
    def _finalize():
        o_ref[...] = jnp.max(acc_ref[...], axis=1).astype(o_ref.dtype)[None]


@functools.partial(jax.jit,
                   static_argnames=("tile_b", "tile_n", "n_splits", "bf16_act"))
def pointnet_medium_forward(x, w1, b1, w2, b2, w3, b3, w4, b4,
                            *, tile_b=None, tile_n=None, n_splits=None,
                            bf16_act=None):
    """x: [B, N, 3] f32 -> [B, 256] f32."""
    B, N, C = x.shape
    H1, H2, H3, D = w1.shape[1], w2.shape[1], w3.shape[1], w4.shape[1]
    if bf16_act is None:
        bf16_act = _default_bf16_act()

    tile_b, B_pad, tile_n, N_pad, n_splits = _choose_tiles(
        B, N, tile_b, tile_n, n_splits)

    # Pad batch / points by edge replication (max over duplicated points is a
    # no-op) and zero-pad the channel dim to a sublane-friendly K=8 for layer 1.
    CK = _round_up(C, 8)
    xp = x.astype(jnp.float32)
    if B_pad > B or N_pad > N:
        xp = jnp.pad(xp, ((0, B_pad - B), (0, N_pad - N), (0, 0)), mode="edge")
    if CK > C:
        xp = jnp.pad(xp, ((0, 0), (0, 0), (0, CK - C)))

    w1p = jnp.pad(w1.astype(jnp.float32), ((0, CK - C), (0, 0)))
    w2b = w2.astype(jnp.bfloat16)
    w3b = w3.astype(jnp.bfloat16)
    w4b = w4.astype(jnp.bfloat16)
    b1r = b1.reshape(1, H1).astype(jnp.float32)
    b2r = b2.reshape(1, H2).astype(jnp.float32)
    b3r = b3.reshape(1, H3).astype(jnp.float32)
    b4r = b4.reshape(1, D).astype(jnp.float32)

    nb = B_pad // tile_b
    nt_per_split = (N_pad // tile_n) // n_splits
    grid = (n_splits, nb, nt_per_split)
    acc_dtype = jnp.bfloat16 if bf16_act else jnp.float32

    kernel = functools.partial(_pointnet_medium_kernel, bf16_act=bf16_act)

    partial_max = pl.pallas_call(
        kernel,
        out_shape=jax.ShapeDtypeStruct((n_splits, B_pad, D), jnp.float32),
        grid_spec=pltpu.PrefetchScalarGridSpec(
            num_scalar_prefetch=0,
            grid=grid,
            in_specs=[
                # points: a (tile_b, tile_n, 8) slab
                pl.BlockSpec((tile_b, tile_n, CK),
                             lambda s, b, n: (b, s * nt_per_split + n, 0)),
                # weights / biases: full blocks, resident across the grid
                pl.BlockSpec((CK, H1), lambda s, b, n: (0, 0)),
                pl.BlockSpec((1, H1), lambda s, b, n: (0, 0)),
                pl.BlockSpec((H1, H2), lambda s, b, n: (0, 0)),
                pl.BlockSpec((1, H2), lambda s, b, n: (0, 0)),
                pl.BlockSpec((H2, H3), lambda s, b, n: (0, 0)),
                pl.BlockSpec((1, H3), lambda s, b, n: (0, 0)),
                pl.BlockSpec((H3, D), lambda s, b, n: (0, 0)),
                pl.BlockSpec((1, D), lambda s, b, n: (0, 0)),
            ],
            # same output block across the point-tile axis -> resident accumulator
            out_specs=pl.BlockSpec((1, tile_b, D), lambda s, b, n: (s, b, 0)),
            scratch_shapes=[pltpu.VMEM((tile_b, 8, D), acc_dtype)],
        ),
        compiler_params=pltpu.CompilerParams(
            dimension_semantics=("parallel", "parallel", "arbitrary"),
            vmem_limit_bytes=48 * 1024 * 1024,   # < v7x's 64 MiB physical VMEM
        ),
    )(xp, w1p, b1r, w2b, b2r, w3b, b3r, w4b, b4r)

    out = jnp.max(partial_max, axis=0)          # combine point-axis splits
    return out[:B] if B_pad > B else out


def init_params(key, point_channel=3, output_dim=256):
    """trunc_normal(std=0.02) weights, zero biases (matches reset_parameters_)."""
    dims = (point_channel, 64, 64, 128, output_dim)
    keys = jax.random.split(key, 4)
    params = []
    for k, cin, cout in zip(keys, dims[:-1], dims[1:]):
        w = (jax.random.truncated_normal(k, -2.0, 2.0, (cin, cout)) * 0.02
             ).astype(jnp.float32)
        b = jnp.zeros((cout,), jnp.float32)
        params += [w, b]
    return tuple(params)


def pointnet_medium_ref(x, w1, b1, w2, b2, w3, b3, w4, b4):
    """Pure-JAX reference matching PyTorch (exact erf GELU, f32)."""
    h = jax.nn.gelu(x @ w1 + b1, approximate=False)
    h = jax.nn.gelu(h @ w2 + b2, approximate=False)
    h = jax.nn.gelu(h @ w3 + b3, approximate=False)
    y = h @ w4 + b4
    return jnp.max(y, axis=1)


if __name__ == "__main__":
    key = jax.random.PRNGKey(0)
    kx, kp = jax.random.split(key)
    params = init_params(kp, point_channel=3)

    def check(B, N, **kw):
        kxi = jax.random.fold_in(kx, 1000 * N + B)
        x = jax.random.normal(kxi, (B, N, 3), dtype=jnp.float32)
        out = jax.block_until_ready(pointnet_medium_forward(x, *params, **kw))
        ref = pointnet_medium_ref(x, *params)
        assert out.shape == (B, 256), out.shape
        # tanh-GELU + bf16 MXU operands perturb numerics at the <~1% level;
        # compare with a scale-relative tolerance of 2e-2.
        err = float(jnp.max(jnp.abs(out - ref)))
        scale = float(jnp.max(jnp.abs(ref)))
        assert err <= 1e-5 + 2e-2 * max(scale, 1e-3), (
            f"mismatch vs reference: err={err}, scale={scale}, shape=({B},{N})")

    check(2, 128)                                     # single point tile
    check(2, 512, tile_n=128)                         # multi-tile + point-axis split
    check(2, 100)                                     # ragged N (edge-replication pad)
    check(2, 128, bf16_act=not _default_bf16_act())   # exercise the other act path

    print("KERNEL_OK")
</pallas_src>

<mosaic_0001>
module attributes {stable_mosaic.version = 11 : i64} {
  func.func @_pointnet_medium_kernel(%arg0: i32, %arg1: i32, %arg2: i32, %arg3: memref<2x128x8xf32, #tpu.memory_space<vmem>>, %arg4: memref<8x64xf32, #tpu.memory_space<vmem>>, %arg5: memref<1x64xf32, #tpu.memory_space<vmem>>, %arg6: memref<64x64xbf16, #tpu.memory_space<vmem>>, %arg7: memref<1x64xf32, #tpu.memory_space<vmem>>, %arg8: memref<64x128xbf16, #tpu.memory_space<vmem>>, %arg9: memref<1x128xf32, #tpu.memory_space<vmem>>, %arg10: memref<128x256xbf16, #tpu.memory_space<vmem>>, %arg11: memref<1x256xf32, #tpu.memory_space<vmem>>, %arg12: memref<1x2x256xf32, #tpu.memory_space<vmem>>, %arg13: memref<2x8x256xf32, #tpu.memory_space<vmem>>) attributes {dimension_semantics = [#tpu.dimension_semantics<parallel>, #tpu.dimension_semantics<parallel>, #tpu.dimension_semantics<arbitrary>], iteration_bounds = array<i64: 1, 1, 1>, scalar_prefetch = 0 : i64, scratch_operands = 1 : i64, tpu.core_type = #tpu.core_type<tc>, window_params = [{transform_indices = @transform_0, window_bounds = array<i64: 2, 128, 8>}, {pipeline_mode = #tpu.pipeline_mode<synchronous>, transform_indices = @transform_1, window_bounds = array<i64: 8, 64>}, {pipeline_mode = #tpu.pipeline_mode<synchronous>, transform_indices = @transform_2, window_bounds = array<i64: 1, 64>}, {pipeline_mode = #tpu.pipeline_mode<synchronous>, transform_indices = @transform_3, window_bounds = array<i64: 64, 64>}, {pipeline_mode = #tpu.pipeline_mode<synchronous>, transform_indices = @transform_4, window_bounds = array<i64: 1, 64>}, {pipeline_mode = #tpu.pipeline_mode<synchronous>, transform_indices = @transform_5, window_bounds = array<i64: 64, 128>}, {pipeline_mode = #tpu.pipeline_mode<synchronous>, transform_indices = @transform_6, window_bounds = array<i64: 1, 128>}, {pipeline_mode = #tpu.pipeline_mode<synchronous>, transform_indices = @transform_7, window_bounds = array<i64: 128, 256>}, {pipeline_mode = #tpu.pipeline_mode<synchronous>, transform_indices = @transform_8, window_bounds = array<i64: 1, 256>}, {transform_indices = @transform_9, window_bounds = array<i64: 1, 2, 256>}]} {
    %c0_i32 = arith.constant 0 : i32
    %0 = arith.cmpi eq, %arg2, %c0_i32 : i32
    %1 = arith.extui %0 : i1 to i32
    %c0_i32_0 = arith.constant 0 : i32
    %2 = arith.cmpi ne, %1, %c0_i32_0 : i32
    scf.if %2 {
      %cst_43 = arith.constant 0xFF800000 : f32
      %75 = vector.broadcast %cst_43 : f32 to vector<2x8x256xf32>
      %c0_44 = arith.constant 0 : index
      %c0_45 = arith.constant 0 : index
      %c0_46 = arith.constant 0 : index
      %76 = vector.load %arg13[%c0_44, %c0_45, %c0_46] : memref<2x8x256xf32, #tpu.memory_space<vmem>>, vector<2x8x256xf32>
      tpu.vector_store %arg13[%c0_44, %c0_45, %c0_46], %75 {strides = array<i32>} : memref<2x8x256xf32, #tpu.memory_space<vmem>>, vector<2x8x256xf32>,
    } else {
    }
    %c0 = arith.constant 0 : index
    %c0_1 = arith.constant 0 : index
    %c0_2 = arith.constant 0 : index
    %3 = vector.load %arg3[%c0, %c0_1, %c0_2] : memref<2x128x8xf32, #tpu.memory_space<vmem>>, vector<2x128x8xf32>
    %4 = vector.shape_cast %3 : vector<2x128x8xf32> to vector<256x8xf32>
    %c0_3 = arith.constant 0 : index
    %c0_4 = arith.constant 0 : index
    %5 = vector.load %arg4[%c0_3, %c0_4] : memref<8x64xf32, #tpu.memory_space<vmem>>, vector<8x64xf32>
    %cst = arith.constant dense<0.000000e+00> : vector<256x64xf32>
    %6 = tpu.matmul %4, %5, %cst {dimension_numbers = #tpu.dot_dimension_numbers<[1], [0], [0], [1], [0, 0, 1, 1], [], []>} : vector<256x8xf32>, vector<8x64xf32>, vector<256x64xf32> -> vector<256x64xf32>
    %c0_5 = arith.constant 0 : index
    %c0_6 = arith.constant 0 : index
    %7 = vector.load %arg5[%c0_5, %c0_6] : memref<1x64xf32, #tpu.memory_space<vmem>>, vector<1x64xf32>
    %8 = vector.broadcast %7 : vector<1x64xf32> to vector<256x64xf32>
    %9 = arith.addf %6, %8 : vector<256x64xf32>
    %10 = arith.mulf %9, %9 : vector<256x64xf32>
    %11 = arith.mulf %9, %10 : vector<256x64xf32>
    %cst_7 = arith.constant 4.471500e-02 : f32
    %12 = vector.broadcast %cst_7 : f32 to vector<256x64xf32>
    %13 = arith.mulf %12, %11 : vector<256x64xf32>
    %14 = arith.addf %9, %13 : vector<256x64xf32>
    %cst_8 = arith.constant 0.797884583 : f32
    %15 = vector.broadcast %cst_8 : f32 to vector<256x64xf32>
    %16 = arith.mulf %15, %14 : vector<256x64xf32>
    %17 = math.tanh %16 : vector<256x64xf32>
    %cst_9 = arith.constant 1.000000e+00 : f32
    %18 = vector.broadcast %cst_9 : f32 to vector<256x64xf32>
    %19 = arith.addf %18, %17 : vector<256x64xf32>
    %cst_10 = arith.constant 5.000000e-01 : f32
    %20 = vector.broadcast %cst_10 : f32 to vector<256x64xf32>
    %21 = arith.mulf %20, %19 : vector<256x64xf32>
    %22 = arith.mulf %9, %21 : vector<256x64xf32>
    %23 = arith.truncf %22 : vector<256x64xf32> to vector<256x64xbf16>
    %c0_11 = arith.constant 0 : index
    %c0_12 = arith.constant 0 : index
    %24 = vector.load %arg6[%c0_11, %c0_12] : memref<64x64xbf16, #tpu.memory_space<vmem>>, vector<64x64xbf16>
    %cst_13 = arith.constant dense<0.000000e+00> : vector<256x64xf32>
    %25 = tpu.matmul %23, %24, %cst_13 {dimension_numbers = #tpu.dot_dimension_numbers<[1], [0], [0], [1], [0, 0, 1, 1], [], []>} : vector<256x64xbf16>, vector<64x64xbf16>, vector<256x64xf32> -> vector<256x64xf32>
    %c0_14 = arith.constant 0 : index
    %c0_15 = arith.constant 0 : index
    %26 = vector.load %arg7[%c0_14, %c0_15] : memref<1x64xf32, #tpu.memory_space<vmem>>, vector<1x64xf32>
    %27 = vector.broadcast %26 : vector<1x64xf32> to vector<256x64xf32>
    %28 = arith.addf %25, %27 : vector<256x64xf32>
    %29 = arith.mulf %28, %28 : vector<256x64xf32>
    %30 = arith.mulf %28, %29 : vector<256x64xf32>
    %cst_16 = arith.constant 4.471500e-02 : f32
    %31 = vector.broadcast %cst_16 : f32 to vector<256x64xf32>
    %32 = arith.mulf %31, %30 : vector<256x64xf32>
    %33 = arith.addf %28, %32 : vector<256x64xf32>
    %cst_17 = arith.constant 0.797884583 : f32
    %34 = vector.broadcast %cst_17 : f32 to vector<256x64xf32>
    %35 = arith.mulf %34, %33 : vector<256x64xf32>
    %36 = math.tanh %35 : vector<256x64xf32>
    %cst_18 = arith.constant 1.000000e+00 : f32
    %37 = vector.broadcast %cst_18 : f32 to vector<256x64xf32>
    %38 = arith.addf %37, %36 : vector<256x64xf32>
    %cst_19 = arith.constant 5.000000e-01 : f32
    %39 = vector.broadcast %cst_19 : f32 to vector<256x64xf32>
    %40 = arith.mulf %39, %38 : vector<256x64xf32>
    %41 = arith.mulf %28, %40 : vector<256x64xf32>
    %42 = arith.truncf %41 : vector<256x64xf32> to vector<256x64xbf16>
    %c0_20 = arith.constant 0 : index
    %c0_21 = arith.constant 0 : index
    %43 = vector.load %arg8[%c0_20, %c0_21] : memref<64x128xbf16, #tpu.memory_space<vmem>>, vector<64x128xbf16>
    %cst_22 = arith.constant dense<0.000000e+00> : vector<256x128xf32>
    %44 = tpu.matmul %42, %43, %cst_22 {dimension_numbers = #tpu.dot_dimension_numbers<[1], [0], [0], [1], [0, 0, 1, 1], [], []>} : vector<256x64xbf16>, vector<64x128xbf16>, vector<256x128xf32> -> vector<256x128xf32>
    %c0_23 = arith.constant 0 : index
    %c0_24 = arith.constant 0 : index
    %45 = vector.load %arg9[%c0_23, %c0_24] : memref<1x128xf32, #tpu.memory_space<vmem>>, vector<1x128xf32>
    %46 = vector.broadcast %45 : vector<1x128xf32> to vector<256x128xf32>
    %47 = arith.addf %44, %46 : vector<256x128xf32>
    %48 = arith.mulf %47, %47 : vector<256x128xf32>
    %49 = arith.mulf %47, %48 : vector<256x128xf32>
    %cst_25 = arith.constant 4.471500e-02 : f32
    %50 = vector.broadcast %cst_25 : f32 to vector<256x128xf32>
    %51 = arith.mulf %50, %49 : vector<256x128xf32>
    %52 = arith.addf %47, %51 : vector<256x128xf32>
    %cst_26 = arith.constant 0.797884583 : f32
    %53 = vector.broadcast %cst_26 : f32 to vector<256x128xf32>
    %54 = arith.mulf %53, %52 : vector<256x128xf32>
    %55 = math.tanh %54 : vector<256x128xf32>
    %cst_27 = arith.constant 1.000000e+00 : f32
    %56 = vector.broadcast %cst_27 : f32 to vector<256x128xf32>
    %57 = arith.addf %56, %55 : vector<256x128xf32>
    %cst_28 = arith.constant 5.000000e-01 : f32
    %58 = vector.broadcast %cst_28 : f32 to vector<256x128xf32>
    %59 = arith.mulf %58, %57 : vector<256x128xf32>
    %60 = arith.mulf %47, %59 : vector<256x128xf32>
    %61 = arith.truncf %60 : vector<256x128xf32> to vector<256x128xbf16>
    %c0_29 = arith.constant 0 : index
    %c0_30 = arith.constant 0 : index
    %62 = vector.load %arg10[%c0_29, %c0_30] : memref<128x256xbf16, #tpu.memory_space<vmem>>, vector<128x256xbf16>
    %cst_31 = arith.constant dense<0.000000e+00> : vector<256x256xf32>
    %63 = tpu.matmul %61, %62, %cst_31 {dimension_numbers = #tpu.dot_dimension_numbers<[1], [0], [0], [1], [0, 0, 1, 1], [], []>} : vector<256x128xbf16>, vector<128x256xbf16>, vector<256x256xf32> -> vector<256x256xf32>
    %c0_32 = arith.constant 0 : index
    %c0_33 = arith.constant 0 : index
    %64 = vector.load %arg11[%c0_32, %c0_33] : memref<1x256xf32, #tpu.memory_space<vmem>>, vector<1x256xf32>
    %65 = vector.broadcast %64 : vector<1x256xf32> to vector<256x256xf32>
    %66 = arith.addf %63, %65 : vector<256x256xf32>
    %67 = vector.shape_cast %66 : vector<256x256xf32> to vector<2x16x8x256xf32>
    %c0_34 = arith.constant 0 : index
    %c0_35 = arith.constant 0 : index
    %c0_36 = arith.constant 0 : index
    %68 = vector.load %arg13[%c0_34, %c0_35, %c0_36] : memref<2x8x256xf32, #tpu.memory_space<vmem>>, vector<2x8x256xf32>
    %cst_37 = arith.constant dense<0xFF800000> : vector<2x8x256xf32>
    %69 = vector.multi_reduction <maximumf>, %67, %cst_37 [1] : vector<2x16x8x256xf32> to vector<2x8x256xf32>
    %70 = arith.maximumf %68, %69 : vector<2x8x256xf32>
    %c0_38 = arith.constant 0 : index
    %c0_39 = arith.constant 0 : index
    %c0_40 = arith.constant 0 : index
    %71 = vector.load %arg13[%c0_38, %c0_39, %c0_40] : memref<2x8x256xf32, #tpu.memory_space<vmem>>, vector<2x8x256xf32>
    tpu.vector_store %arg13[%c0_38, %c0_39, %c0_40], %70 {strides = array<i32>} : memref<2x8x256xf32, #tpu.memory_space<vmem>>, vector<2x8x256xf32>,
    %c0_i32_41 = arith.constant 0 : i32
    %72 = arith.cmpi eq, %arg2, %c0_i32_41 : i32
    %73 = arith.extui %72 : i1 to i32
    %c0_i32_42 = arith.constant 0 : i32
    %74 = arith.cmpi ne, %73, %c0_i32_42 : i32
    scf.if %74 {
      %c0_43 = arith.constant 0 : index
      %c0_44 = arith.constant 0 : index
      %c0_45 = arith.constant 0 : index
      %75 = vector.load %arg13[%c0_43, %c0_44, %c0_45] : memref<2x8x256xf32, #tpu.memory_space<vmem>>, vector<2x8x256xf32>
      %cst_46 = arith.constant dense<0xFF800000> : vector<2x256xf32>
      %76 = vector.multi_reduction <maximumf>, %75, %cst_46 [1] : vector<2x8x256xf32> to vector<2x256xf32>
      %77 = vector.shape_cast %76 : vector<2x256xf32> to vector<1x2x256xf32>
      %c0_47 = arith.constant 0 : index
      %c0_48 = arith.constant 0 : index
      %c0_49 = arith.constant 0 : index
      %78 = vector.load %arg12[%c0_47, %c0_48, %c0_49] : memref<1x2x256xf32, #tpu.memory_space<vmem>>, vector<1x2x256xf32>
      tpu.vector_store %arg12[%c0_47, %c0_48, %c0_49], %77 {strides = array<i32>} : memref<1x2x256xf32, #tpu.memory_space<vmem>>, vector<1x2x256xf32>,
    } else {
    }
    return
  }
  func.func @transform_0(%arg0: i32, %arg1: i32, %arg2: i32) -> (i32, i32, i32) {
    %c1_i32 = arith.constant 1 : i32
    %0 = arith.muli %arg0, %c1_i32 : i32
    %1 = arith.addi %0, %arg2 : i32
    %c0_i32 = arith.constant 0 : i32
    %c0_i32_0 = arith.constant 0 : i32
    return %arg1, %1, %c0_i32 : i32, i32, i32
  }
  func.func @transform_1(%arg0: i32, %arg1: i32, %arg2: i32) -> (i32, i32) {
    %c0_i32 = arith.constant 0 : i32
    %c0_i32_0 = arith.constant 0 : i32
    %c0_i32_1 = arith.constant 0 : i32
    return %c0_i32, %c0_i32_0 : i32, i32
  }
  func.func @transform_2(%arg0: i32, %arg1: i32, %arg2: i32) -> (i32, i32) {
    %c0_i32 = arith.constant 0 : i32
    %c0_i32_0 = arith.constant 0 : i32
    %c0_i32_1 = arith.constant 0 : i32
    return %c0_i32, %c0_i32_0 : i32, i32
  }
  func.func @transform_3(%arg0: i32, %arg1: i32, %arg2: i32) -> (i32, i32) {
    %c0_i32 = arith.constant 0 : i32
    %c0_i32_0 = arith.constant 0 : i32
    %c0_i32_1 = arith.constant 0 : i32
    return %c0_i32, %c0_i32_0 : i32, i32
  }
  func.func @transform_4(%arg0: i32, %arg1: i32, %arg2: i32) -> (i32, i32) {
    %c0_i32 = arith.constant 0 : i32
    %c0_i32_0 = arith.constant 0 : i32
    %c0_i32_1 = arith.constant 0 : i32
    return %c0_i32, %c0_i32_0 : i32, i32
  }
  func.func @transform_5(%arg0: i32, %arg1: i32, %arg2: i32) -> (i32, i32) {
    %c0_i32 = arith.constant 0 : i32
    %c0_i32_0 = arith.constant 0 : i32
    %c0_i32_1 = arith.constant 0 : i32
    return %c0_i32, %c0_i32_0 : i32, i32
  }
  func.func @transform_6(%arg0: i32, %arg1: i32, %arg2: i32) -> (i32, i32) {
    %c0_i32 = arith.constant 0 : i32
    %c0_i32_0 = arith.constant 0 : i32
    %c0_i32_1 = arith.constant 0 : i32
    return %c0_i32, %c0_i32_0 : i32, i32
  }
  func.func @transform_7(%arg0: i32, %arg1: i32, %arg2: i32) -> (i32, i32) {
    %c0_i32 = arith.constant 0 : i32
    %c0_i32_0 = arith.constant 0 : i32
    %c0_i32_1 = arith.constant 0 : i32
    return %c0_i32, %c0_i32_0 : i32, i32
  }
  func.func @transform_8(%arg0: i32, %arg1: i32, %arg2: i32) -> (i32, i32) {
    %c0_i32 = arith.constant 0 : i32
    %c0_i32_0 = arith.constant 0 : i32
    %c0_i32_1 = arith.constant 0 : i32
    return %c0_i32, %c0_i32_0 : i32, i32
  }
  func.func @transform_9(%arg0: i32, %arg1: i32, %arg2: i32) -> (i32, i32, i32) {
    %c0_i32 = arith.constant 0 : i32
    %c0_i32_0 = arith.constant 0 : i32
    return %arg0, %arg1, %c0_i32 : i32, i32, i32
  }
}

</mosaic_0001>

<bundles_post_ra>
// kernel: pointnet_medium_forward.1
= control target key start
LH: loop header
LB: loop body
LE: loop exit
PB: predicated region body
PF: predicated region fallthrough
CT: control target
= control target key end

     0   :  { %vm101_vm0 = vcmask 64512   ;;  %s3446_s0 = inlined_call_operand.vmem [shape: f32[2,128,8], index: 0, kind: input, shape index: {}]   ;;  %s3447_s1 = inlined_call_operand.vmem [shape: f32[8,64], index: 1, kind: input, shape index: {}]   ;;  %s3448_s2 = inlined_call_operand.vmem [shape: f32[1,64], index: 2, kind: input, shape index: {}]   ;;  %s3449_s3 = inlined_call_operand.vmem [shape: bf16[64,64], index: 3, kind: input, shape index: {}]   ;;  %s3450_s4 = inlined_call_operand.vmem [shape: f32[1,64], index: 4, kind: input, shape index: {}]   ;;  %s3451_s5 = inlined_call_operand.vmem [shape: bf16[64,128], index: 5, kind: input, shape index: {}]   ;;  %s3452_s6 = inlined_call_operand.vmem [shape: f32[1,128], index: 6, kind: input, shape index: {}]   ;;  %s3453_s7 = inlined_call_operand.vmem [shape: bf16[128,256], index: 7, kind: input, shape index: {}]   ;;  %s3454_s8 = inlined_call_operand.vmem [shape: f32[1,256], index: 8, kind: input, shape index: {}]   ;;  %s3455_s9 = inlined_call_operand.hbm [shape: f32[1,2,256], index: 9, kind: output, shape index: {}]  }
   0x1   :  { %v96_v0 = vld [vmem:[%s3447_s1] sm:$0xff] }
   0x2   :  { %v64_v1 = vld [vmem:[%s3446_s0] sm:$0xff]  ;;  %213 = vmatpush.msra.mxu0 %v96_v0  ;;  %2183 = vmatpush.msra.mxu1 %v96_v0 }
   0x3   :  { %1999 = vmatmul.msk.f32.vlgmr.msra.gmra.mxu0 %vm101_vm0, %v64_v1  ;;  %2184 = vmatpush.msra.mxu2 %v96_v0 }
   0x4   :  { %2185 = vmatpush.msra.mxu3 %v96_v0 }
   0x5   :  { %14 = vsyncpa [#allocation4], 0  ;;  %v65_v2 = vld [vmem:[%s3446_s0 + $0x8] sm:$0xff]  ;;  %v66_v3 = vld [vmem:[%s3446_s0 + $0x10] sm:$0xff]  ;;  %vm651_vm1 = vcmask 523264   ;;  %vm1959_vm2 = vcmask 1041408  }
   0x6   :  { %v74_v4 = vld [vmem:[%s3446_s0 + $0x50] sm:$0xff]  ;;  %v67_v5 = vld [vmem:[%s3446_s0 + $0x18] sm:$0xff]  ;;  %v68_v7 = vld [vmem:[%s3446_s0 + $0x20] sm:$0xff]  ;;  %vm1967_vm3 = vcmask 1041409   ;;  %vm1969_vm4 = vcmask 1043459   ;;  %vm1971_vm5 = vcmask 1045509  }
   0x7   :  { %2009 = vmatmul.msk.f32.vlgmr.msra.gmra.mxu1 %vm101_vm0, %v74_v4  ;;  %v75_v6 = vld [vmem:[%s3446_s0 + $0x58] sm:$0xff]  ;;  %v76_v8 = vld [vmem:[%s3446_s0 + $0x60] sm:$0xff]  ;;  %v69_v9 = vld [vmem:[%s3446_s0 + $0x28] sm:$0xff]  ;;  %s1984_s19 = sshll.u32 %s3455_s9, 4  ;;  %vm1973_vm6 = vcmask 1047559   ;;  %s1985_s19 = int_to_ptr.hbm [resolvable:$true] %s1984_s19 }
   0x8   :  { %v77_v10 = vld [vmem:[%s3446_s0 + $0x68] sm:$0xff]  ;;  %v2162_v11 = vld [vmem:[%s3449_s3 + $0x18] sm:$0xff]  ;;  %v2161_v12 = vld [vmem:[%s3449_s3 + $0x10] sm:$0xff] }
   0x9   :  { %704 = vmatpush.bf16.msrb.mxu1 %v2162_v11  ;;  %v83_v13 = vld [vmem:[%s3446_s0 + $0x98] sm:$0xff]  ;;  %v70_v14 = vld [vmem:[%s3446_s0 + $0x30] sm:$0xff]  ;;  %v72_v18 = vld [vmem:[%s3446_s0 + $0x40] sm:$0xff] }
   0xa   :  { %2018 = vmatmul.msk.f32.vlgmr.msra.gmra.mxu2 %vm101_vm0, %v83_v13  ;;  %v78_v15 = vld [vmem:[%s3446_s0 + $0x70] sm:$0xff]  ;;  %v71_v16 = vld [vmem:[%s3446_s0 + $0x38] sm:$0xff]  ;;  %v80_v19 = vld [vmem:[%s3446_s0 + $0x80] sm:$0xff] }
   0xb   :  { %2000 = vmatmul.msk.f32.gmra.mxu0 %vm101_vm0, %v65_v2  ;;  %v79_v17 = vld [vmem:[%s3446_s0 + $0x78] sm:$0xff]  ;;  %v73_v20 = vld [vmem:[%s3446_s0 + $0x48] sm:$0xff]  ;;  %v84_v22 = vld [vmem:[%s3446_s0 + $0xa0] sm:$0xff] }
   0xc   :  { %v81_v21 = vld [vmem:[%s3446_s0 + $0x88] sm:$0xff]  ;;  %v82_v23 = vld [vmem:[%s3446_s0 + $0x90] sm:$0xff]  ;;  %v87_v26 = vld [vmem:[%s3446_s0 + $0xb8] sm:$0xff] }
   0xd   :  { %705 = vmatpush.bf16.msrb.mxu1 %v2161_v12  ;;  %v85_v24 = vld [vmem:[%s3446_s0 + $0xa8] sm:$0xff]  ;;  %v86_v25 = vld [vmem:[%s3446_s0 + $0xb0] sm:$0xff]  ;;  %v2580_v28 = vld [vmem:[%s3448_s2] ss:$0 sm:$0xff] }
   0xe   :  { %v2160_v27 = vld [vmem:[%s3449_s3 + $0x8] sm:$0xff]  ;;  %v2159_v29 = vld [vmem:[%s3449_s3] sm:$0xff]  ;;  %v91_v52 = vld [vmem:[%s3446_s0 + $0xd8] sm:$0xff] }
   0xf   :  { %2010 = vmatmul.msk.f32.gmra.mxu1 %vm101_vm0, %v75_v6  ;;  %v88_v30 = vld [vmem:[%s3446_s0 + $0xc0] sm:$0xff]  ;;  %v89_v36 = vld [vmem:[%s3446_s0 + $0xc8] sm:$0xff]  ;;  %2026 = vmatmul.msk.f32.vlgmr.msra.gmra.mxu3 %vm101_vm0, %v91_v52  ;;  %v90_v1 = vld [vmem:[%s3446_s0 + $0xd0] sm:$0xff] }
  0x10   :  { %v92_v2 = vld [vmem:[%s3446_s0 + $0xe0] sm:$0xff] }
  0x11   :  { %706 = vmatpush.bf16.msrb.mxu1 %v2160_v27 }
  0x12   :  { %2019 = vmatmul.msk.f32.gmra.mxu2 %vm101_vm0, %v84_v22 }
  0x13   :  { %2001 = vmatmul.msk.f32.gmra.mxu0 %vm101_vm0, %v66_v3 }
  0x15   :  { %707 = vmatpush.bf16.msrb.mxu1 %v2159_v29  ;;  %v94_v29 = vld [vmem:[%s3446_s0 + $0xf0] sm:$0xff] }
  0x17   :  { %2011 = vmatmul.msk.f32.gmra.mxu1 %vm101_vm0, %v76_v8  ;;  %2027 = vmatmul.msk.f32.gmra.mxu3 %vm101_vm0, %v92_v2 }
  0x1a   :  { %2020 = vmatmul.msk.f32.gmra.mxu2 %vm101_vm0, %v85_v24 }
  0x1b   :  { %2002 = vmatmul.msk.f32.gmra.mxu0 %vm101_vm0, %v67_v5 }
  0x1f   :  { %2012 = vmatmul.msk.f32.gmra.mxu1 %vm101_vm0, %v77_v10 }
  0x22   :  { %2021 = vmatmul.msk.f32.gmra.mxu2 %vm101_vm0, %v86_v25 }
  0x23   :  { %2003 = vmatmul.msk.f32.gmra.mxu0 %vm101_vm0, %v68_v7 }
  0x27   :  { %2013 = vmatmul.msk.f32.gmra.mxu1 %vm101_vm0, %v78_v15 }
  0x2a   :  { %2022 = vmatmul.msk.f32.gmra.mxu2 %vm101_vm0, %v87_v26 }
  0x2b   :  { %2004 = vmatmul.msk.f32.gmra.mxu0 %vm101_vm0, %v69_v9 }
  0x2f   :  { %2014 = vmatmul.msk.f32.gmra.mxu1 %vm101_vm0, %v79_v17 }
  0x32   :  { %2023 = vmatmul.msk.f32.gmra.mxu2 %vm101_vm0, %v88_v30 }
  0x33   :  { %2005 = vmatmul.msk.f32.gmra.mxu0 %vm101_vm0, %v70_v14  ;;  %v93_v14 = vld [vmem:[%s3446_s0 + $0xe8] sm:$0xff] }
  0x34   :  { %2028 = vmatmul.msk.f32.gmra.mxu3 %vm101_vm0, %v93_v14 }
  0x37   :  { %2015 = vmatmul.msk.f32.gmra.mxu1 %vm101_vm0, %v80_v19 }
  0x3a   :  { %2024 = vmatmul.msk.f32.gmra.mxu2 %vm101_vm0, %v89_v36 }
  0x3b   :  { %2006 = vmatmul.msk.f32.gmra.mxu0 %vm101_vm0, %v71_v16 }
  0x3c   :  { %2029 = vmatmul.msk.f32.gmra.mxu3 %vm101_vm0, %v94_v29 }
  0x3f   :  { %2016 = vmatmul.msk.f32.gmra.mxu1 %vm101_vm0, %v81_v21 }
  0x42   :  { %2025 = vmatmul.msk.f32.gmra.mxu2 %vm101_vm0, %v90_v1 }
  0x43   :  { %2007 = vmatmul.msk.f32.gmra.mxu0 %vm101_vm0, %v72_v18 }
  0x47   :  { %2017 = vmatmul.msk.f32.gmra.mxu1 %vm101_vm0, %v82_v23 }
  0x4b   :  { %2008 = vmatmul.msk.f32.gmra.mxu0 %vm101_vm0, %v73_v20 }
  0x80   :  { %v215_v31 = vpop.f32.mrf.mxu0 }
  0x81   :  { %v216_v32 = vadd.f32 %v2580_v28, %v215_v31 }
  0x83   :  { %v311_v33 = vmul.f32 %v216_v32, %v216_v32 }
  0x84   :  { %v245_v22 = vpop.f32.mrf.mxu1 }
  0x85   :  { %v343_v34 = vmul.f32 %v311_v33, %v216_v32  ;;  %v2633_v2 = vadd.f32 %v2580_v28, %v245_v22 }
  0x87   :  { %v375_v35 = vmul.f32 0.044715, %v343_v34 }
  0x88   :  { %v218_v37 = vpop.f32.mrf.mxu0 }
  0x89   :  { %v407_v38 = vadd.f32 %v375_v35, %v216_v32  ;;  %v219_v39 = vadd.f32 %v2580_v28, %v218_v37 }
  0x8b   :  { %v439_v40 = vmul.f32 0.7978846, %v407_v38  ;;  %v312_v41 = vmul.f32 %v219_v39, %v219_v39 }
  0x8d   :  { %v344_v42 = vmul.f32 %v312_v41, %v219_v39  ;;  %2198 = vtanh.f32 %v439_v40  ;;  %v95_v40 = vld [vmem:[%s3446_s0 + $0xf8] sm:$0xff]  ;;  %v248_v41 = vpop.f32.mrf.mxu1 }
  0x8e   :  { %2030 = vmatmul.msk.f32.gmra.mxu3 %vm101_vm0, %v95_v40 }
  0x8f   :  { %v376_v43 = vmul.f32 0.044715, %v344_v42 }
  0x90   :  { %v221_v44 = vpop.f32.mrf.mxu0 }
  0x91   :  { %v408_v45 = vadd.f32 %v376_v43, %v219_v39  ;;  %v222_v46 = vadd.f32 %v2580_v28, %v221_v44 }
  0x93   :  { %v440_v47 = vmul.f32 0.7978846, %v408_v45  ;;  %v313_v48 = vmul.f32 %v222_v46, %v222_v46  ;;  %v2199_v49 = vpop.eup %2198 }
  0x94   :  { %v503_v53 = vadd.f32 1.0, %v2199_v49 }
  0x95   :  { %2200 = vtanh.f32 %v440_v47  ;;  %v345_v50 = vmul.f32 %v313_v48, %v222_v46 }
  0x96   :  { %v535_v60 = vmul.f32 0.5, %v503_v53 }
  0x97   :  { %v377_v51 = vmul.f32 0.044715, %v345_v50 }
  0x98   :  { %v224_v54 = vpop.f32.mrf.mxu0  ;;  %v567_v3 = vmul.f32 %v535_v60, %v216_v32 }
  0x99   :  { %v409_v55 = vadd.f32 %v377_v51, %v222_v46  ;;  %v225_v56 = vadd.f32 %v2580_v28, %v224_v54 }
  0x9b   :  { %v2201_v57 = vpop.eup %2200  ;;  %v441_v58 = vmul.f32 0.7978846, %v409_v55  ;;  %v314_v59 = vmul.f32 %v225_v56, %v225_v56 }
  0x9c   :  { %v504_v61 = vadd.f32 1.0, %v2201_v57 }
  0x9d   :  { %v346_v62 = vmul.f32 %v314_v59, %v225_v56  ;;  %2202 = vtanh.f32 %v441_v58 }
  0x9e   :  { %v536_v63 = vmul.f32 0.5, %v504_v61 }
  0x9f   :  { %v378_v0 = vmul.f32 0.044715, %v346_v62 }
  0xa0   :  { %v227_v4 = vpop.f32.mrf.mxu0  ;;  %v568_v5 = vmul.f32 %v536_v63, %v219_v39 }
  0xa1   :  { %v410_v6 = vadd.f32 %v378_v0, %v225_v56  ;;  %v228_v7 = vadd.f32 %v2580_v28, %v227_v4  ;;  %v2629_v0 = vadd.f32 %v2580_v28, %v248_v41 }
  0xa2   :  { %v599_v8 = vpack.c.bf16 %v568_v5, %v567_v3 }
  0xa3   :  { %v442_v9 = vmul.f32 0.7978846, %v410_v6  ;;  %v315_v10 = vmul.f32 %v228_v7, %v228_v7  ;;  %v2203_v11 = vpop.eup %2202  ;;  %v322_v5 = vmul.f32 %v2629_v0, %v2629_v0 }
  0xa4   :  { %2047 = vmatmul.msk.bf16.vlgmr.msrb.gmra.mxu1 %vm651_vm1, %v599_v8  ;;  %v505_v16 = vadd.f32 1.0, %v2203_v11  ;;  %v321_v8 = vmul.f32 %v2633_v2, %v2633_v2 }
  0xa5   :  { %v347_v12 = vmul.f32 %v315_v10, %v228_v7  ;;  %2204 = vtanh.f32 %v442_v9 }
  0xa6   :  { %v537_v24 = vmul.f32 0.5, %v505_v16 }
  0xa7   :  { %v379_v13 = vmul.f32 0.044715, %v347_v12 }
  0xa8   :  { %v230_v15 = vpop.f32.mrf.mxu0  ;;  %v569_v31 = vmul.f32 %v537_v24, %v222_v46 }
  0xa9   :  { %v411_v17 = vadd.f32 %v379_v13, %v228_v7  ;;  %v231_v18 = vadd.f32 %v2580_v28, %v230_v15  ;;  %v354_v15 = vmul.f32 %v322_v5, %v2629_v0 }
  0xab   :  { %v2205_v19 = vpop.eup %2204  ;;  %v443_v20 = vmul.f32 0.7978846, %v411_v17  ;;  %v316_v21 = vmul.f32 %v231_v18, %v231_v18  ;;  %v386_v22 = vmul.f32 0.044715, %v354_v15 }
  0xac   :  { %v506_v23 = vadd.f32 1.0, %v2205_v19 }
  0xad   :  { %v348_v25 = vmul.f32 %v316_v21, %v231_v18  ;;  %2206 = vtanh.f32 %v443_v20 }
  0xae   :  { %v538_v26 = vmul.f32 0.5, %v506_v23 }
  0xaf   :  { %v380_v27 = vmul.f32 0.044715, %v348_v25 }
  0xb0   :  { %v233_v30 = vpop.f32.mrf.mxu0  ;;  %v570_v32 = vmul.f32 %v538_v26, %v225_v56  ;;  %v251_v56 = vpop.f32.mrf.mxu1 }
  0xb1   :  { %v412_v33 = vadd.f32 %v380_v27, %v231_v18  ;;  %v234_v34 = vadd.f32 %v2580_v28, %v233_v30  ;;  %v418_v30 = vadd.f32 %v386_v22, %v2629_v0 }
  0xb2   :  { %v600_v35 = vpack.c.bf16 %v570_v32, %v569_v31 }
  0xb3   :  { %v444_v36 = vmul.f32 0.7978846, %v412_v33  ;;  %v317_v37 = vmul.f32 %v234_v34, %v234_v34  ;;  %v2207_v38 = vpop.eup %2206 }
  0xb4   :  { %2048 = vmatmul.msk.bf16.gmra.mxu1 %vm651_vm1, %v600_v35  ;;  %v507_v44 = vadd.f32 1.0, %v2207_v38 }
  0xb5   :  { %v349_v39 = vmul.f32 %v317_v37, %v234_v34  ;;  %2208 = vtanh.f32 %v444_v36  ;;  %v2649_v36 = vadd.f32 %v2580_v28, %v251_v56 }
  0xb6   :  { %v539_v51 = vmul.f32 0.5, %v507_v44 }
  0xb7   :  { %v381_v42 = vmul.f32 0.044715, %v349_v39  ;;  %v323_v40 = vmul.f32 %v2649_v36, %v2649_v36 }
  0xb8   :  { %v236_v43 = vpop.f32.mrf.mxu0  ;;  %v571_v57 = vmul.f32 %v539_v51, %v228_v7  ;;  %v254_v11 = vpop.f32.mrf.mxu1 }
  0xb9   :  { %v413_v45 = vadd.f32 %v381_v42, %v234_v34  ;;  %v237_v46 = vadd.f32 %v2580_v28, %v236_v43  ;;  %v2644_v31 = vadd.f32 %v2580_v28, %v254_v11 }
  0xbb   :  { %v2209_v47 = vpop.eup %2208  ;;  %v445_v48 = vmul.f32 0.7978846, %v413_v45  ;;  %v318_v49 = vmul.f32 %v237_v46, %v237_v46  ;;  %v324_v37 = vmul.f32 %v2644_v31, %v2644_v31  ;;  %v355_v45 = vmul.f32 %v323_v40, %v2649_v36 }
  0xbc   :  { %v508_v50 = vadd.f32 1.0, %v2209_v47 }
  0xbd   :  { %v350_v52 = vmul.f32 %v318_v49, %v237_v46  ;;  %2210 = vtanh.f32 %v445_v48  ;;  %v356_v42 = vmul.f32 %v324_v37, %v2644_v31  ;;  %v387_v51 = vmul.f32 0.044715, %v355_v45 }
  0xbe   :  { %v540_v53 = vmul.f32 0.5, %v508_v50 }
  0xbf   :  { %v382_v54 = vmul.f32 0.044715, %v350_v52  ;;  %v388_v48 = vmul.f32 0.044715, %v356_v42 }
  0xc0   :  { %v239_v55 = vpop.f32.mrf.mxu0  ;;  %v572_v58 = vmul.f32 %v540_v53, %v231_v18  ;;  %v353_v18 = vmul.f32 %v321_v8, %v2633_v2  ;;  %v257_v32 = vpop.f32.mrf.mxu1 }
  0xc1   :  { %v414_v59 = vadd.f32 %v382_v54, %v237_v46  ;;  %v240_v60 = vadd.f32 %v2580_v28, %v239_v55  ;;  %v420_v55 = vadd.f32 %v388_v48, %v2644_v31  ;;  %v2659_v56 = vadd.f32 %v2580_v28, %v257_v32 }
  0xc2   :  { %v601_v61 = vpack.c.bf16 %v572_v58, %v571_v57  ;;  %v385_v25 = vmul.f32 0.044715, %v353_v18  ;;  %v2166_v57 = vld [vmem:[%s3451_s5 + $0x18] sm:$0xff]  ;;  %v419_v58 = vadd.f32 %v387_v51, %v2649_v36 }
  0xc3   :  { %v446_v62 = vmul.f32 0.7978846, %v414_v59  ;;  %v319_v63 = vmul.f32 %v240_v60, %v240_v60  ;;  %v2211_v1 = vpop.eup %2210  ;;  %1181 = vmatpush.bf16.msrb.mxu2 %v2166_v57 }
  0xc4   :  { %2049 = vmatmul.msk.bf16.gmra.mxu1 %vm651_vm1, %v601_v61  ;;  %v509_v7 = vadd.f32 1.0, %v2211_v1  ;;  %v417_v35 = vadd.f32 %v385_v25, %v2633_v2 }
  0xc5   :  { %v351_v3 = vmul.f32 %v319_v63, %v240_v60  ;;  %2212 = vtanh.f32 %v446_v62  ;;  %v452_v62 = vmul.f32 0.7978846, %v420_v55  ;;  %v325_v63 = vmul.f32 %v2659_v56, %v2659_v56 }
  0xc6   :  { %v541_v17 = vmul.f32 0.5, %v509_v7  ;;  %v449_v39 = vmul.f32 0.7978846, %v417_v35 }
  0xc7   :  { %v383_v4 = vmul.f32 0.044715, %v351_v3  ;;  %v451_v3 = vmul.f32 0.7978846, %v419_v58  ;;  %v357_v7 = vmul.f32 %v325_v63, %v2659_v56 }
  0xc8   :  { %v242_v6 = vpop.f32.mrf.mxu0  ;;  %v573_v23 = vmul.f32 %v541_v17, %v234_v34  ;;  %v450_v34 = vmul.f32 0.7978846, %v418_v30 }
  0xc9   :  { %v415_v9 = vadd.f32 %v383_v4, %v240_v60  ;;  %v243_v10 = vadd.f32 %v2580_v28, %v242_v6  ;;  %v389_v11 = vmul.f32 0.044715, %v357_v7 }
  0xcb   :  { %v2213_v12 = vpop.eup %2212  ;;  %v447_v13 = vmul.f32 0.7978846, %v415_v9  ;;  %v320_v14 = vmul.f32 %v243_v10, %v243_v10  ;;  %v421_v17 = vadd.f32 %v389_v11, %v2659_v56 }
  0xcc   :  { %v510_v16 = vadd.f32 1.0, %v2213_v12 }
  0xcd   :  { %v352_v19 = vmul.f32 %v320_v14, %v243_v10  ;;  %2214 = vtanh.f32 %v447_v13 }
  0xce   :  { %v542_v20 = vmul.f32 0.5, %v510_v16 }
  0xcf   :  { %v384_v21 = vmul.f32 0.044715, %v352_v19  ;;  %v2165_v19 = vld [vmem:[%s3451_s5 + $0x10] sm:$0xff] }
  0xd0   :  { %v574_v24 = vmul.f32 %v542_v20, %v237_v46  ;;  %v260_v46 = vpop.f32.mrf.mxu1  ;;  %v272_v20 = vpop.f32.mrf.mxu2  ;;  %1182 = vmatpush.bf16.msrb.mxu2 %v2165_v19 }
  0xd1   :  { %v416_v26 = vadd.f32 %v384_v21, %v243_v10  ;;  %v2667_v59 = vadd.f32 %v2580_v28, %v260_v46 }
  0xd2   :  { %v602_v27 = vpack.c.bf16 %v574_v24, %v573_v23  ;;  %v453_v23 = vmul.f32 0.7978846, %v421_v17 }
  0xd3   :  { %v448_v29 = vmul.f32 0.7978846, %v416_v26  ;;  %v2215_v33 = vpop.eup %2214  ;;  %v326_v4 = vmul.f32 %v2667_v59, %v2667_v59 }
  0xd4   :  { %2050 = vmatmul.msk.bf16.gmra.mxu1 %vm651_vm1, %v602_v27  ;;  %v511_v38 = vadd.f32 1.0, %v2215_v33 }
  0xd5   :  { %2216 = vtanh.f32 %v448_v29  ;;  %v358_v8 = vmul.f32 %v326_v4, %v2667_v59 }
  0xd6   :  { %2218 = vtanh.f32 %v450_v34  ;;  %v543_v44 = vmul.f32 0.5, %v511_v38 }
  0xd7   :  { %2220 = vtanh.f32 %v449_v39  ;;  %v390_v12 = vmul.f32 0.044715, %v358_v8 }
  0xd8   :  { %v575_v49 = vmul.f32 %v543_v44, %v240_v60  ;;  %v263_v1 = vpop.f32.mrf.mxu1  ;;  %2222 = vtanh.f32 %v452_v62  ;;  %v275_v37 = vpop.f32.mrf.mxu2  ;;  %v2699_v44 = vadd.f32 %v2580_v28, %v272_v20 }
  0xd9   :  { %2224 = vtanh.f32 %v451_v3  ;;  %v2679_v18 = vadd.f32 %v2580_v28, %v263_v1  ;;  %v2716_v4 = vadd.f32 %v2580_v28, %v275_v37 }
  0xda   :  { %2226 = vtanh.f32 %v453_v23  ;;  %v330_v48 = vmul.f32 %v2699_v44, %v2699_v44 }
  0xdb   :  { %v2217_v41 = vpop.eup %2216  ;;  %v327_v24 = vmul.f32 %v2679_v18, %v2679_v18 }
  0xdc   :  { %v512_v43 = vadd.f32 1.0, %v2217_v41  ;;  %v2219_v52 = vpop.eup %2218 }
  0xdd   :  { %v2221_v54 = vpop.eup %2220  ;;  %v514_v61 = vadd.f32 1.0, %v2219_v52  ;;  %v359_v30 = vmul.f32 %v327_v24, %v2679_v18 }
  0xde   :  { %v544_v47 = vmul.f32 0.5, %v512_v43  ;;  %v513_v60 = vadd.f32 1.0, %v2221_v54  ;;  %v2223_v13 = vpop.eup %2222  ;;  %v362_v54 = vmul.f32 %v330_v48, %v2699_v44 }
  0xdf   :  { %v546_v6 = vmul.f32 0.5, %v514_v61  ;;  %v2225_v16 = vpop.eup %2224  ;;  %v516_v22 = vadd.f32 1.0, %v2223_v13  ;;  %v391_v34 = vmul.f32 0.044715, %v359_v30 }
  0xe0   :  { %v576_v50 = vmul.f32 %v544_v47, %v243_v10  ;;  %v545_v5 = vmul.f32 0.5, %v513_v60  ;;  %v266_v14 = vpop.f32.mrf.mxu1  ;;  %v515_v21 = vadd.f32 1.0, %v2225_v16  ;;  %v2227_v39 = vpop.eup %2226  ;;  %v394_v60 = vmul.f32 0.044715, %v362_v54 }
  0xe1   :  { %v578_v10 = vmul.f32 %v546_v6, %v2629_v0  ;;  %v2687_v0 = vadd.f32 %v2580_v28, %v266_v14  ;;  %v548_v29 = vmul.f32 0.5, %v516_v22  ;;  %v423_v43 = vadd.f32 %v391_v34, %v2679_v18  ;;  %v278_v52 = vpop.f32.mrf.mxu2 }
  0xe2   :  { %v603_v53 = vpack.c.bf16 %v576_v50, %v575_v49  ;;  %v577_v9 = vmul.f32 %v545_v5, %v2633_v2  ;;  %v422_v2 = vadd.f32 %v390_v12, %v2667_v59  ;;  %v547_v27 = vmul.f32 0.5, %v515_v21  ;;  %v2164_v12 = vld [vmem:[%s3451_s5 + $0x8] sm:$0xff]  ;;  %v2163_v21 = vld [vmem:[%s3451_s5] sm:$0xff] }
  0xe3   :  { %v328_v26 = vmul.f32 %v2687_v0, %v2687_v0  ;;  %v580_v35 = vmul.f32 %v548_v29, %v2644_v31  ;;  %v517_v46 = vadd.f32 1.0, %v2227_v39  ;;  %v455_v47 = vmul.f32 0.7978846, %v423_v43  ;;  %1183 = vmatpush.bf16.msrb.mxu2 %v2164_v12 }
  0xe4   :  { %2051 = vmatmul.msk.bf16.gmra.mxu1 %vm651_vm1, %v603_v53  ;;  %v604_v15 = vpack.c.bf16 %v578_v10, %v577_v9  ;;  %v454_v25 = vmul.f32 0.7978846, %v422_v2  ;;  %v579_v33 = vmul.f32 %v547_v27, %v2649_v36  ;;  %v426_v3 = vadd.f32 %v394_v60, %v2699_v44  ;;  %v2736_v2 = vld [vmem:[%s3450_s4] ss:$0 sm:$0xff] }
  0xe5   :  { %v360_v32 = vmul.f32 %v328_v26, %v2687_v0  ;;  %v549_v53 = vmul.f32 0.5, %v517_v46  ;;  %v2721_v7 = vadd.f32 %v2580_v28, %v278_v52  ;;  %v331_v9 = vmul.f32 %v2716_v4, %v2716_v4 }
  0xe6   :  { %2228 = vtanh.f32 %v454_v25  ;;  %v605_v41 = vpack.c.bf16 %v580_v35, %v579_v33  ;;  %v458_v8 = vmul.f32 0.7978846, %v426_v3 }
  0xe7   :  { %v392_v38 = vmul.f32 0.044715, %v360_v32  ;;  %2230 = vtanh.f32 %v455_v47  ;;  %v581_v58 = vmul.f32 %v549_v53, %v2659_v56  ;;  %v332_v11 = vmul.f32 %v2721_v7, %v2721_v7  ;;  %1184 = vmatpush.bf16.msrb.mxu2 %v2163_v21 }
  0xe8   :  { %v269_v40 = vpop.f32.mrf.mxu1 }
  0xe9   :  { %v424_v45 = vadd.f32 %v392_v38, %v2687_v0  ;;  %v2704_v36 = vadd.f32 %v2580_v28, %v269_v40  ;;  %v281_v5 = vpop.f32.mrf.mxu2  ;;  %v364_v16 = vmul.f32 %v332_v11, %v2721_v7 }
  0xea   :  { %v2747_v30 = vadd.f32 %v2580_v28, %v281_v5 }
  0xeb   :  { %v456_v49 = vmul.f32 0.7978846, %v424_v45  ;;  %v329_v50 = vmul.f32 %v2704_v36, %v2704_v36  ;;  %v396_v23 = vmul.f32 0.044715, %v364_v16 }
  0xec   :  { %v2229_v42 = vpop.eup %2228  ;;  %v333_v39 = vmul.f32 %v2747_v30, %v2747_v30 }
  0xed   :  { %v518_v31 = vadd.f32 1.0, %v2229_v42  ;;  %2232 = vtanh.f32 %v456_v49  ;;  %v361_v55 = vmul.f32 %v329_v50, %v2704_v36  ;;  %v2231_v62 = vpop.eup %2230  ;;  %v428_v32 = vadd.f32 %v396_v23, %v2721_v7 }
  0xee   :  { %v519_v56 = vadd.f32 1.0, %v2231_v62  ;;  %2234 = vtanh.f32 %v458_v8  ;;  %v365_v49 = vmul.f32 %v333_v39, %v2747_v30 }
  0xef   :  { %v550_v51 = vmul.f32 0.5, %v518_v31  ;;  %v393_v61 = vmul.f32 0.044715, %v361_v55  ;;  %v460_v42 = vmul.f32 0.7978846, %v428_v32 }
  0xf0   :  { %v551_v14 = vmul.f32 0.5, %v519_v56 }
  0xf1   :  { %v582_v57 = vmul.f32 %v550_v51, %v2667_v59  ;;  %v425_v6 = vadd.f32 %v393_v61, %v2704_v36  ;;  %v284_v19 = vpop.f32.mrf.mxu2 }
  0xf2   :  { %v583_v20 = vmul.f32 %v551_v14, %v2679_v18  ;;  %v2754_v33 = vadd.f32 %v2580_v28, %v284_v19 }
  0xf3   :  { %v606_v63 = vpack.c.bf16 %v582_v57, %v581_v58  ;;  %v2233_v1 = vpop.eup %2232  ;;  %v457_v10 = vmul.f32 0.7978846, %v425_v6  ;;  %v397_v57 = vmul.f32 0.044715, %v365_v49 }
  0xf4   :  { %2052 = vmatmul.msk.bf16.gmra.mxu1 %vm651_vm1, %v604_v15  ;;  %v520_v59 = vadd.f32 1.0, %v2233_v1  ;;  %v363_v15 = vmul.f32 %v331_v9, %v2716_v4  ;;  %v2235_v25 = vpop.eup %2234  ;;  %v334_v43 = vmul.f32 %v2754_v33, %v2754_v33 }
  0xf5   :  { %2236 = vtanh.f32 %v457_v10  ;;  %v522_v35 = vadd.f32 1.0, %v2235_v25  ;;  %v296_v25 = vpop.f32.mrf.mxu3 }
  0xf6   :  { %v552_v13 = vmul.f32 0.5, %v520_v59  ;;  %v395_v22 = vmul.f32 0.044715, %v363_v15  ;;  %v366_v52 = vmul.f32 %v334_v43, %v2754_v33 }
  0xf7   :  { %v554_v31 = vmul.f32 0.5, %v522_v35 }
  0xf8   :  { %v584_v17 = vmul.f32 %v552_v13, %v2687_v0  ;;  %v427_v29 = vadd.f32 %v395_v22, %v2716_v4  ;;  %v398_v60 = vmul.f32 0.044715, %v366_v52 }
  0xf9   :  { %v586_v53 = vmul.f32 %v554_v31, %v2699_v44  ;;  %v429_v44 = vadd.f32 %v397_v57, %v2747_v30  ;;  %v2811_v57 = vadd.f32 %v2580_v28, %v296_v25 }
  0xfa   :  { %v607_v0 = vpack.c.bf16 %v584_v17, %v583_v20  ;;  %v459_v38 = vmul.f32 0.7978846, %v427_v29  ;;  %v430_v8 = vadd.f32 %v398_v60, %v2754_v33 }
  0xfb   :  { %v2237_v27 = vpop.eup %2236  ;;  %v461_v14 = vmul.f32 0.7978846, %v429_v44 }
  0xfc   :  { %v521_v37 = vadd.f32 1.0, %v2237_v27  ;;  %2238 = vtanh.f32 %v459_v38  ;;  %v462_v17 = vmul.f32 0.7978846, %v430_v8 }
  0xfd   :  { %2240 = vtanh.f32 %v460_v42 }
  0xfe   :  { %v553_v48 = vmul.f32 0.5, %v521_v37 }
 0x100   :  { %v585_v55 = vmul.f32 %v553_v48, %v2704_v36 }
 0x102   :  { %v2239_v62 = vpop.eup %2238  ;;  %v608_v5 = vpack.c.bf16 %v586_v53, %v585_v55 }
 0x103   :  { %v2241_v6 = vpop.eup %2240  ;;  %v523_v13 = vadd.f32 1.0, %v2239_v62 }
 0x104   :  { %2053 = vmatmul.msk.bf16.gmra.mxu1 %vm651_vm1, %v605_v41  ;;  %v287_v41 = vpop.f32.mrf.mxu2  ;;  %v524_v11 = vadd.f32 1.0, %v2241_v6  ;;  %v338_v6 = vmul.f32 %v2811_v57, %v2811_v57 }
 0x105   :  { %v2778_v59 = vadd.f32 %v2580_v28, %v287_v41 }
 0x106   :  { %v556_v22 = vmul.f32 0.5, %v524_v11 }
 0x107   :  { %v335_v15 = vmul.f32 %v2778_v59, %v2778_v59 }
 0x108   :  { %v588_v38 = vmul.f32 %v556_v22, %v2721_v7 }
 0x109   :  { %v367_v29 = vmul.f32 %v335_v15, %v2778_v59 }
 0x10b   :  { %v399_v42 = vmul.f32 0.044715, %v367_v29 }
 0x10c   :  { %v290_v1 = vpop.f32.mrf.mxu2 }
 0x10d   :  { %v2785_v9 = vadd.f32 %v2580_v28, %v290_v1 }
 0x10f   :  { %v336_v20 = vmul.f32 %v2785_v9, %v2785_v9 }
 0x114   :  { %2054 = vmatmul.msk.bf16.gmra.mxu1 %vm651_vm1, %v606_v63  ;;  %v293_v7 = vpop.f32.mrf.mxu2 }
 0x115   :  { %v2818_v60 = vadd.f32 %v2580_v28, %v293_v7 }
 0x121   :  { %v709_v24 = vpop.f32.mrf.mxu1 }
 0x122   :  { %v2743_v26 = vadd.f32 %v2736_v2, %v709_v24 }
 0x124   :  { %v789_v18 = vmul.f32 %v2743_v26, %v2743_v26  ;;  %2055 = vmatmul.msk.bf16.gmra.mxu1 %vm651_vm1, %v607_v0  ;;  %v555_v0 = vmul.f32 0.5, %v523_v13 }
 0x126   :  { %v821_v34 = vmul.f32 %v789_v18, %v2743_v26 }
 0x128   :  { %v853_v40 = vmul.f32 0.044715, %v821_v34  ;;  %v368_v34 = vmul.f32 %v336_v20, %v2785_v9 }
 0x129   :  { %v711_v45 = vpop.f32.mrf.mxu1 }
 0x12a   :  { %v885_v46 = vadd.f32 %v853_v40, %v2743_v26  ;;  %v2763_v47 = vadd.f32 %v2736_v2, %v711_v45  ;;  %v587_v40 = vmul.f32 %v555_v0, %v2716_v4  ;;  %v400_v31 = vmul.f32 0.044715, %v368_v34 }
 0x12c   :  { %v917_v50 = vmul.f32 0.7978846, %v885_v46  ;;  %v790_v51 = vmul.f32 %v2763_v47, %v2763_v47  ;;  %v609_v52 = vpack.c.bf16 %v588_v38, %v587_v40 }
 0x12e   :  { %v822_v54 = vmul.f32 %v790_v51, %v2763_v47  ;;  %2242 = vtanh.f32 %v917_v50 }
 0x130   :  { %v854_v58 = vmul.f32 0.044715, %v822_v54  ;;  %v431_v54 = vadd.f32 %v399_v42, %v2778_v59 }
 0x131   :  { %v714_v61 = vpop.f32.mrf.mxu1 }
 0x132   :  { %v886_v63 = vadd.f32 %v854_v58, %v2763_v47  ;;  %v2774_v3 = vadd.f32 %v2736_v2, %v714_v61  ;;  %v432_v58 = vadd.f32 %v400_v31, %v2785_v9 }
 0x134   :  { %v918_v36 = vmul.f32 0.7978846, %v886_v63  ;;  %v791_v56 = vmul.f32 %v2774_v3, %v2774_v3  ;;  %2056 = vmatmul.msk.bf16.gmra.mxu1 %vm651_vm1, %v608_v5  ;;  %v2243_v10 = vpop.eup %2242  ;;  %v463_v5 = vmul.f32 0.7978846, %v431_v54 }
 0x135   :  { %v981_v19 = vadd.f32 1.0, %v2243_v10 }
 0x136   :  { %2244 = vtanh.f32 %v918_v36  ;;  %v823_v12 = vmul.f32 %v791_v56, %v2774_v3  ;;  %v464_v36 = vmul.f32 0.7978846, %v432_v58  ;;  %v337_v56 = vmul.f32 %v2818_v60, %v2818_v60 }
 0x137   :  { %2246 = vtanh.f32 %v461_v14  ;;  %v1013_v35 = vmul.f32 0.5, %v981_v19 }
 0x138   :  { %v855_v16 = vmul.f32 0.044715, %v823_v12  ;;  %2248 = vtanh.f32 %v462_v17  ;;  %v369_v20 = vmul.f32 %v337_v56, %v2818_v60 }
 0x139   :  { %v716_v21 = vpop.f32.mrf.mxu1  ;;  %v1045_v45 = vmul.f32 %v1013_v35, %v2743_v26 }
 0x13a   :  { %v887_v23 = vadd.f32 %v855_v16, %v2774_v3  ;;  %v2794_v24 = vadd.f32 %v2736_v2, %v716_v21  ;;  %v370_v16 = vmul.f32 %v338_v6, %v2811_v57  ;;  %v401_v35 = vmul.f32 0.044715, %v369_v20 }
 0x13c   :  { %v2245_v27 = vpop.eup %2244  ;;  %v919_v18 = vmul.f32 0.7978846, %v887_v23  ;;  %v792_v32 = vmul.f32 %v2794_v24, %v2794_v24 }
 0x13d   :  { %v982_v37 = vadd.f32 1.0, %v2245_v27  ;;  %v2247_v49 = vpop.eup %2246 }
 0x13e   :  { %v824_v39 = vmul.f32 %v792_v32, %v2794_v24  ;;  %2250 = vtanh.f32 %v919_v18  ;;  %v2249_v53 = vpop.eup %2248  ;;  %v525_v1 = vadd.f32 1.0, %v2247_v49  ;;  %v402_v18 = vmul.f32 0.044715, %v370_v16 }
 0x13f   :  { %v1014_v41 = vmul.f32 0.5, %v982_v37  ;;  %v526_v62 = vadd.f32 1.0, %v2249_v53 }
 0x140   :  { %v856_v43 = vmul.f32 0.044715, %v824_v39  ;;  %v557_v14 = vmul.f32 0.5, %v525_v1 }
 0x141   :  { %v719_v46 = vpop.f32.mrf.mxu1  ;;  %v1046_v48 = vmul.f32 %v1014_v41, %v2763_v47  ;;  %v299_v47 = vpop.f32.mrf.mxu3  ;;  %v558_v11 = vmul.f32 0.5, %v526_v62 }
 0x142   :  { %v888_v50 = vadd.f32 %v856_v43, %v2794_v24  ;;  %v2807_v51 = vadd.f32 %v2736_v2, %v719_v46  ;;  %v589_v27 = vmul.f32 %v557_v14, %v2747_v30  ;;  %v434_v30 = vadd.f32 %v402_v18, %v2811_v57 }
 0x143   :  { %v1077_v4 = vpack.c.bf16 %v1046_v48, %v1045_v45  ;;  %v590_v23 = vmul.f32 %v558_v11, %v2754_v33  ;;  %v2845_v45 = vadd.f32 %v2580_v28, %v299_v47 }
 0x144   :  { %v920_v55 = vmul.f32 0.7978846, %v888_v50  ;;  %v793_v26 = vmul.f32 %v2807_v51, %v2807_v51  ;;  %2057 = vmatmul.msk.bf16.gmra.mxu1 %vm651_vm1, %v609_v52  ;;  %v2251_v61 = vpop.eup %2250  ;;  %v466_v52 = vmul.f32 0.7978846, %v434_v30 }
 0x145   :  { %2079 = vmatmul.msk.bf16.vlgmr.msrb.gmra.mxu2 %vm651_vm1, %v1077_v4  ;;  %v983_v10 = vadd.f32 1.0, %v2251_v61  ;;  %v610_v41 = vpack.c.bf16 %v590_v23, %v589_v27  ;;  %v339_v53 = vmul.f32 %v2845_v45, %v2845_v45 }
 0x146   :  { %v825_v63 = vmul.f32 %v793_v26, %v2807_v51  ;;  %2252 = vtanh.f32 %v920_v55 }
 0x147   :  { %2254 = vtanh.f32 %v463_v5  ;;  %v1015_v22 = vmul.f32 0.5, %v983_v10  ;;  %v371_v6 = vmul.f32 %v339_v53, %v2845_v45 }
 0x148   :  { %v857_v44 = vmul.f32 0.044715, %v825_v63  ;;  %2256 = vtanh.f32 %v464_v36 }
 0x149   :  { %v721_v8 = vpop.f32.mrf.mxu1  ;;  %v302_v0 = vpop.f32.mrf.mxu3  ;;  %v1047_v37 = vmul.f32 %v1015_v22, %v2774_v3  ;;  %v403_v16 = vmul.f32 0.044715, %v371_v6 }
 0x14a   :  { %v889_v12 = vadd.f32 %v857_v44, %v2807_v51  ;;  %v2828_v13 = vadd.f32 %v2736_v2, %v721_v8  ;;  %v2852_v46 = vadd.f32 %v2580_v28, %v302_v0 }
 0x14b   :  { %v435_v18 = vadd.f32 %v403_v16, %v2845_v45 }
 0x14c   :  { %v2253_v15 = vpop.eup %2252  ;;  %v921_v17 = vmul.f32 0.7978846, %v889_v12  ;;  %v794_v19 = vmul.f32 %v2828_v13, %v2828_v13  ;;  %v340_v26 = vmul.f32 %v2852_v46, %v2852_v46 }
 0x14d   :  { %v984_v21 = vadd.f32 1.0, %v2253_v15  ;;  %v2255_v39 = vpop.eup %2254 }
 0x14e   :  { %v826_v25 = vmul.f32 %v794_v19, %v2828_v13  ;;  %2258 = vtanh.f32 %v921_v17  ;;  %v2257_v42 = vpop.eup %2256  ;;  %v527_v7 = vadd.f32 1.0, %v2255_v39  ;;  %v372_v56 = vmul.f32 %v340_v26, %v2852_v46 }
 0x14f   :  { %v1016_v29 = vmul.f32 0.5, %v984_v21  ;;  %v528_v49 = vadd.f32 1.0, %v2257_v42 }
 0x150   :  { %v858_v32 = vmul.f32 0.044715, %v826_v25  ;;  %v559_v1 = vmul.f32 0.5, %v527_v7  ;;  %v404_v19 = vmul.f32 0.044715, %v372_v56 }
 0x151   :  { %v724_v34 = vpop.f32.mrf.mxu1  ;;  %v1048_v38 = vmul.f32 %v1016_v29, %v2794_v24  ;;  %v433_v24 = vadd.f32 %v401_v35, %v2818_v60  ;;  %v305_v54 = vpop.f32.mrf.mxu3  ;;  %v560_v61 = vmul.f32 0.5, %v528_v49 }
 0x152   :  { %v890_v40 = vadd.f32 %v858_v32, %v2828_v13  ;;  %v2841_v33 = vadd.f32 %v2736_v2, %v724_v34  ;;  %v591_v14 = vmul.f32 %v559_v1, %v2778_v59  ;;  %v2879_v32 = vadd.f32 %v2580_v28, %v305_v54 }
 0x153   :  { %v1078_v43 = vpack.c.bf16 %v1048_v38, %v1047_v37  ;;  %v465_v55 = vmul.f32 0.7978846, %v433_v24  ;;  %v592_v11 = vmul.f32 %v560_v61, %v2785_v9 }
 0x154   :  { %v922_v31 = vmul.f32 0.7978846, %v890_v40  ;;  %v795_v3 = vmul.f32 %v2841_v33, %v2841_v33  ;;  %2058 = vmatmul.msk.bf16.gmra.mxu1 %vm651_vm1, %v610_v41  ;;  %v2259_v48 = vpop.eup %2258  ;;  %v467_v41 = vmul.f32 0.7978846, %v435_v18  ;;  %v341_v42 = vmul.f32 %v2879_v32, %v2879_v32 }
 0x155   :  { %2080 = vmatmul.msk.bf16.gmra.mxu2 %vm651_vm1, %v1078_v43  ;;  %v985_v58 = vadd.f32 1.0, %v2259_v48  ;;  %v611_v27 = vpack.c.bf16 %v592_v11, %v591_v14 }
 0x156   :  { %v827_v50 = vmul.f32 %v795_v3, %v2841_v33  ;;  %2260 = vtanh.f32 %v922_v31 }
 0x157   :  { %2262 = vtanh.f32 %v466_v52  ;;  %v1017_v10 = vmul.f32 0.5, %v985_v58  ;;  %v373_v52 = vmul.f32 %v341_v42, %v2879_v32 }
 0x158   :  { %v859_v4 = vmul.f32 0.044715, %v827_v50  ;;  %2264 = vtanh.f32 %v465_v55 }
 0x159   :  { %v726_v47 = vpop.f32.mrf.mxu1  ;;  %v1049_v21 = vmul.f32 %v1017_v10, %v2807_v51  ;;  %v308_v0 = vpop.f32.mrf.mxu3  ;;  %v405_v1 = vmul.f32 0.044715, %v373_v52 }
 0x15a   :  { %v891_v62 = vadd.f32 %v859_v4, %v2841_v33  ;;  %v2862_v63 = vadd.f32 %v2736_v2, %v726_v47  ;;  %v2886_v34 = vadd.f32 %v2580_v28, %v308_v0 }
 0x15c   :  { %v2261_v5 = vpop.eup %2260  ;;  %v923_v44 = vmul.f32 0.7978846, %v891_v62  ;;  %v796_v36 = vmul.f32 %v2862_v63, %v2862_v63  ;;  %v342_v31 = vmul.f32 %v2886_v34, %v2886_v34 }
 0x15d   :  { %v986_v8 = vadd.f32 1.0, %v2261_v5  ;;  %v2263_v23 = vpop.eup %2262 }
 0x15e   :  { %v828_v12 = vmul.f32 %v796_v36, %v2862_v63  ;;  %2266 = vtanh.f32 %v923_v44  ;;  %v2265_v29 = vpop.eup %2264  ;;  %v530_v40 = vadd.f32 1.0, %v2263_v23  ;;  %v374_v54 = vmul.f32 %v342_v31, %v2886_v34 }
 0x15f   :  { %v1018_v15 = vmul.f32 0.5, %v986_v8  ;;  %v529_v39 = vadd.f32 1.0, %v2265_v29 }
 0x160   :  { %v860_v17 = vmul.f32 0.044715, %v828_v12  ;;  %v562_v50 = vmul.f32 0.5, %v530_v40  ;;  %v406_v6 = vmul.f32 0.044715, %v374_v54 }
 0x161   :  { %v729_v20 = vpop.f32.mrf.mxu1  ;;  %v1050_v22 = vmul.f32 %v1018_v15, %v2828_v13  ;;  %v436_v13 = vadd.f32 %v404_v19, %v2852_v46  ;;  %v561_v49 = vmul.f32 0.5, %v529_v39 }
 0x162   :  { %v892_v25 = vadd.f32 %v860_v17, %v2862_v63  ;;  %v2875_v9 = vadd.f32 %v2736_v2, %v729_v20  ;;  %v594_v61 = vmul.f32 %v562_v50, %v2811_v57  ;;  %v437_v57 = vadd.f32 %v405_v1, %v2879_v32 }
 0x163   :  { %v1079_v59 = vpack.c.bf16 %v1050_v22, %v1049_v21  ;;  %v468_v30 = vmul.f32 0.7978846, %v436_v13  ;;  %v593_v58 = vmul.f32 %v561_v49, %v2818_v60 }
 0x164   :  { %v924_v35 = vmul.f32 0.7978846, %v892_v25  ;;  %v797_v51 = vmul.f32 %v2875_v9, %v2875_v9  ;;  %2059 = vmatmul.msk.bf16.gmra.mxu1 %vm651_vm1, %v611_v27  ;;  %v2267_v37 = vpop.eup %2266  ;;  %v469_v21 = vmul.f32 0.7978846, %v437_v57 }
 0x165   :  { %2081 = vmatmul.msk.bf16.gmra.mxu2 %vm651_vm1, %v1079_v59  ;;  %v987_v28 = vadd.f32 1.0, %v2267_v37  ;;  %v612_v12 = vpack.c.bf16 %v594_v61, %v593_v58 }
 0x166   :  { %v829_v38 = vmul.f32 %v797_v51, %v2875_v9  ;;  %2268 = vtanh.f32 %v924_v35 }
 0x167   :  { %2270 = vtanh.f32 %v467_v41  ;;  %v1019_v26 = vmul.f32 0.5, %v987_v28 }
 0x168   :  { %v861_v43 = vmul.f32 0.044715, %v829_v38  ;;  %2272 = vtanh.f32 %v468_v30 }
 0x169   :  { %v731_v3 = vpop.f32.mrf.mxu1  ;;  %v1051_v36 = vmul.f32 %v1019_v26, %v2841_v33  ;;  %v438_v33 = vadd.f32 %v406_v6, %v2886_v34 }
 0x16a   :  { %v893_v24 = vadd.f32 %v861_v43, %v2875_v9  ;;  %v2896_v48 = vadd.f32 %v2736_v2, %v731_v3 }
 0x16b   :  { %v470_v23 = vmul.f32 0.7978846, %v438_v33 }
 0x16c   :  { %v2269_v7 = vpop.eup %2268  ;;  %v925_v53 = vmul.f32 0.7978846, %v893_v24  ;;  %v798_v4 = vmul.f32 %v2896_v48, %v2896_v48 }
 0x16d   :  { %v988_v55 = vadd.f32 1.0, %v2269_v7  ;;  %v2271_v8 = vpop.eup %2270 }
 0x16e   :  { %v830_v47 = vmul.f32 %v798_v4, %v2896_v48  ;;  %2274 = vtanh.f32 %v925_v53  ;;  %v2273_v60 = vpop.eup %2272  ;;  %v531_v17 = vadd.f32 1.0, %v2271_v8 }
 0x16f   :  { %v1020_v62 = vmul.f32 0.5, %v988_v55  ;;  %v532_v20 = vadd.f32 1.0, %v2273_v60 }
 0x170   :  { %v862_v5 = vmul.f32 0.044715, %v830_v47  ;;  %v563_v27 = vmul.f32 0.5, %v531_v17 }
 0x171   :  { %v734_v44 = vpop.f32.mrf.mxu1  ;;  %v1052_v56 = vmul.f32 %v1020_v62, %v2862_v63  ;;  %v564_v18 = vmul.f32 0.5, %v532_v20 }
 0x172   :  { %v894_v10 = vadd.f32 %v862_v5, %v2896_v48  ;;  %v2909_v11 = vadd.f32 %v2736_v2, %v734_v44  ;;  %v595_v39 = vmul.f32 %v563_v27, %v2845_v45 }
 0x173   :  { %v1080_v14 = vpack.c.bf16 %v1052_v56, %v1051_v36  ;;  %v596_v41 = vmul.f32 %v564_v18, %v2852_v46 }
 0x174   :  { %v926_v15 = vmul.f32 0.7978846, %v894_v10  ;;  %v799_v16 = vmul.f32 %v2909_v11, %v2909_v11  ;;  %2060 = vmatmul.msk.bf16.gmra.mxu1 %vm651_vm1, %v612_v12  ;;  %v2275_v63 = vpop.eup %2274 }
 0x175   :  { %2082 = vmatmul.msk.bf16.gmra.mxu2 %vm651_vm1, %v1080_v14  ;;  %v989_v0 = vadd.f32 1.0, %v2275_v63  ;;  %v613_v50 = vpack.c.bf16 %v596_v41, %v595_v39 }
 0x176   :  { %2276 = vtanh.f32 %v926_v15  ;;  %v831_v19 = vmul.f32 %v799_v16, %v2909_v11 }
 0x177   :  { %2278 = vtanh.f32 %v469_v21  ;;  %v1021_v38 = vmul.f32 0.5, %v989_v0 }
 0x178   :  { %v863_v22 = vmul.f32 0.044715, %v831_v19  ;;  %2280 = vtanh.f32 %v470_v23 }
 0x179   :  { %v736_v25 = vpop.f32.mrf.mxu1  ;;  %v1053_v31 = vmul.f32 %v1021_v38, %v2875_v9 }
 0x17a   :  { %v895_v29 = vadd.f32 %v863_v22, %v2909_v11  ;;  %v737_v59 = vadd.f32 %v2736_v2, %v736_v25 }
 0x17c   :  { %v2277_v35 = vpop.eup %2276  ;;  %v927_v51 = vmul.f32 0.7978846, %v895_v29  ;;  %v800_v13 = vmul.f32 %v737_v59, %v737_v59 }
 0x17d   :  { %v990_v37 = vadd.f32 1.0, %v2277_v35  ;;  %v2279_v28 = vpop.eup %2278 }
 0x17e   :  { %v832_v40 = vmul.f32 %v800_v13, %v737_v59  ;;  %2282 = vtanh.f32 %v927_v51  ;;  %v2281_v7 = vpop.eup %2280  ;;  %v533_v4 = vadd.f32 1.0, %v2279_v28 }
 0x17f   :  { %v1022_v42 = vmul.f32 0.5, %v990_v37  ;;  %v534_v9 = vadd.f32 1.0, %v2281_v7 }
 0x180   :  { %v864_v43 = vmul.f32 0.044715, %v832_v40  ;;  %v565_v47 = vmul.f32 0.5, %v533_v4  ;;  %v2182_v4 = vld [vmem:[%s3453_s7 + $0x74] sm:$0xf0] }
 0x181   :  { %v739_v30 = vpop.f32.mrf.mxu1  ;;  %v1054_v3 = vmul.f32 %v1022_v42, %v2896_v48  ;;  %v566_v62 = vmul.f32 0.5, %v534_v9 }
 0x182   :  { %v896_v24 = vadd.f32 %v864_v43, %v737_v59  ;;  %v740_v49 = vadd.f32 %v2736_v2, %v739_v30  ;;  %v597_v56 = vmul.f32 %v565_v47, %v2879_v32 }
 0x183   :  { %v1081_v52 = vpack.c.bf16 %v1054_v3, %v1053_v31  ;;  %v598_v10 = vmul.f32 %v566_v62, %v2886_v34  ;;  %v2147_v62 = vld [vmem:[%s3453_s7 + $0x68] sm:$0xf0] }
 0x184   :  { %v928_v53 = vmul.f32 0.7978846, %v896_v24  ;;  %v801_v45 = vmul.f32 %v740_v49, %v740_v49  ;;  %2061 = vmatmul.msk.bf16.gmra.mxu1 %vm651_vm1, %v613_v50  ;;  %v2283_v46 = vpop.eup %2282 }
 0x185   :  { %2083 = vmatmul.msk.bf16.gmra.mxu2 %vm651_vm1, %v1081_v52  ;;  %v991_v26 = vadd.f32 1.0, %v2283_v46  ;;  %v614_v63 = vpack.c.bf16 %v598_v10, %v597_v56  ;;  %v2181_v52 = vld [vmem:[%s3453_s7 + $0x74] sm:$0xf] }
 0x186   :  { %2284 = vtanh.f32 %v928_v53  ;;  %v833_v54 = vmul.f32 %v801_v45, %v740_v49  ;;  %v2155_v53 = vld [vmem:[%s3453_s7 + $0x78] sm:$0xf0]  ;;  %v2153_v45 = vld [vmem:[%s3453_s7 + $0x70] sm:$0xf] }
 0x187   :  { %v1023_v36 = vmul.f32 0.5, %v991_v26  ;;  %v2961_v46 = vor.u32 %v2181_v52, %v2155_v53  ;;  %v2171_v52 = vld [vmem:[%s3453_s7 + $0x24] sm:$0xf] }
 0x188   :  { %v865_v55 = vmul.f32 0.044715, %v833_v54 }
 0x189   :  { %v741_v48 = vpop.f32.mrf.mxu1  ;;  %v1055_v57 = vmul.f32 %v1023_v36, %v2909_v11  ;;  %1761 = vmatpush.bf16.msrb.mxu0 %v2961_v46 }
 0x18a   :  { %v897_v58 = vadd.f32 %v865_v55, %v740_v49  ;;  %v742_v61 = vadd.f32 %v2736_v2, %v741_v48  ;;  %v2154_v48 = vor.u32 %v2182_v4, %v2153_v45  ;;  %v2115_v4 = vld [vmem:[%s3453_s7 + $0x28] sm:$0xf0] }
 0x18c   :  { %v2285_v1 = vpop.eup %2284  ;;  %v929_v5 = vmul.f32 0.7978846, %v897_v58  ;;  %v802_v6 = vmul.f32 %v742_v61, %v742_v61  ;;  %1672 = vmatpush.bf16.msrb.mxu3 %v2154_v48 }
 0x18d   :  { %v992_v44 = vadd.f32 1.0, %v2285_v1  ;;  %v2145_v1 = vld [vmem:[%s3453_s7 + $0x60] sm:$0xf] }
 0x18e   :  { %v834_v8 = vmul.f32 %v802_v6, %v742_v61  ;;  %2286 = vtanh.f32 %v929_v5 }
 0x18f   :  { %v1024_v12 = vmul.f32 0.5, %v992_v44  ;;  %v2180_v44 = vld [vmem:[%s3453_s7 + $0x64] sm:$0xf0] }
 0x190   :  { %v866_v60 = vmul.f32 0.044715, %v834_v8  ;;  %v2146_v56 = vor.u32 %v2180_v44, %v2145_v1 }
 0x191   :  { %v744_v14 = vpop.f32.mrf.mxu1  ;;  %v1056_v15 = vmul.f32 %v1024_v12, %v737_v59 }
 0x192   :  { %v898_v16 = vadd.f32 %v866_v60, %v742_v61  ;;  %v2932_v33 = vadd.f32 %v2736_v2, %v744_v14  ;;  %1673 = vmatpush.bf16.msrb.mxu3 %v2146_v56 }
 0x193   :  { %v1082_v17 = vpack.c.bf16 %v1056_v15, %v1055_v57  ;;  %v2137_v57 = vld [vmem:[%s3453_s7 + $0x50] sm:$0xf]  ;;  %v2178_v15 = vld [vmem:[%s3453_s7 + $0x54] sm:$0xf0] }
 0x194   :  { %v930_v19 = vmul.f32 0.7978846, %v898_v16  ;;  %v803_v32 = vmul.f32 %v2932_v33, %v2932_v33  ;;  %2062 = vmatmul.msk.bf16.gmra.mxu1 %vm651_vm1, %v614_v63  ;;  %v2287_v34 = vpop.eup %2286  ;;  %v2177_v16 = vld [vmem:[%s3453_s7 + $0x54] sm:$0xf]  ;;  %v2138_v63 = vor.u32 %v2178_v15, %v2137_v57  ;;  %v2168_v57 = vld [vmem:[%s3453_s7 + $0x4] sm:$0xf0] }
 0x195   :  { %2084 = vmatmul.msk.bf16.gmra.mxu2 %vm651_vm1, %v1082_v17  ;;  %v993_v22 = vadd.f32 1.0, %v2287_v34  ;;  %v2139_v17 = vld [vmem:[%s3453_s7 + $0x58] sm:$0xf0]  ;;  %v2167_v15 = vld [vmem:[%s3453_s7 + $0x4] sm:$0xf] }
 0x196   :  { %2288 = vtanh.f32 %v930_v19  ;;  %v835_v20 = vmul.f32 %v803_v32, %v2932_v33  ;;  %v3004_v34 = vor.u32 %v2177_v16, %v2139_v17  ;;  %1674 = vmatpush.bf16.msrb.mxu3 %v2138_v63 }
 0x197   :  { %v1025_v18 = vmul.f32 0.5, %v993_v22  ;;  %v2176_v22 = vld [vmem:[%s3453_s7 + $0x44] sm:$0xf0] }
 0x198   :  { %v867_v11 = vmul.f32 0.044715, %v835_v20 }
 0x199   :  { %v746_v21 = vpop.f32.mrf.mxu1  ;;  %v1057_v38 = vmul.f32 %v1025_v18, %v740_v49 }
 0x19a   :  { %v899_v23 = vadd.f32 %v867_v11, %v2932_v33  ;;  %v747_v25 = vadd.f32 %v2736_v2, %v746_v21  ;;  %v2129_v21 = vld [vmem:[%s3453_s7 + $0x40] sm:$0xf] }
 0x19c   :  { %v2289_v0 = vpop.eup %2288  ;;  %v931_v27 = vmul.f32 0.7978846, %v899_v23  ;;  %v804_v29 = vmul.f32 %v747_v25, %v747_v25  ;;  %v2175_v23 = vld [vmem:[%s3453_s7 + $0x44] sm:$0xf] }
 0x19d   :  { %v994_v59 = vadd.f32 1.0, %v2289_v0  ;;  %v2131_v0 = vld [vmem:[%s3453_s7 + $0x48] sm:$0xf0] }
 0x19e   :  { %v836_v35 = vmul.f32 %v804_v29, %v747_v25  ;;  %2290 = vtanh.f32 %v931_v27  ;;  %v3021_v29 = vor.u32 %v2175_v23, %v2131_v0 }
 0x19f   :  { %v1026_v51 = vmul.f32 0.5, %v994_v59 }
 0x1a0   :  { %v868_v13 = vmul.f32 0.044715, %v836_v35 }
 0x1a1   :  { %v749_v37 = vpop.f32.mrf.mxu1  ;;  %v1058_v39 = vmul.f32 %v1026_v51, %v742_v61  ;;  %v2179_v61 = vld [vmem:[%s3453_s7 + $0x64] sm:$0xf] }
 0x1a2   :  { %v900_v40 = vadd.f32 %v868_v13, %v747_v25  ;;  %v2942_v41 = vadd.f32 %v2736_v2, %v749_v37  ;;  %v2979_v6 = vor.u32 %v2179_v61, %v2147_v62  ;;  %v2121_v13 = vld [vmem:[%s3453_s7 + $0x30] sm:$0xf]  ;;  %v2174_v37 = vld [vmem:[%s3453_s7 + $0x34] sm:$0xf0] }
 0x1a3   :  { %v1083_v42 = vpack.c.bf16 %v1058_v39, %v1057_v38  ;;  %v2173_v38 = vld [vmem:[%s3453_s7 + $0x34] sm:$0xf]  ;;  %v2122_v39 = vor.u32 %v2174_v37, %v2121_v13  ;;  %v2105_v61 = vld [vmem:[%s3453_s7 + $0x10] sm:$0xf]  ;;  %v2170_v62 = vld [vmem:[%s3453_s7 + $0x14] sm:$0xf0] }
 0x1a4   :  { %v932_v43 = vmul.f32 0.7978846, %v900_v40  ;;  %v805_v30 = vmul.f32 %v2942_v41, %v2942_v41  ;;  %v2291_v31 = vpop.eup %2290  ;;  %1762 = vmatpush.bf16.msrb.mxu0 %v2979_v6  ;;  %v2123_v40 = vld [vmem:[%s3453_s7 + $0x38] sm:$0xf0]  ;;  %v2106_v1 = vor.u32 %v2170_v62, %v2105_v61  ;;  %v3148_v61 = vld [vmem:[%s3450_s4] ss:$0 sm:$0xff] }
 0x1a5   :  { %2085 = vmatmul.msk.bf16.gmra.mxu2 %vm651_vm1, %v1083_v42  ;;  %v995_v50 = vadd.f32 1.0, %v2291_v31  ;;  %v3042_v31 = vor.u32 %v2173_v38, %v2123_v40 }
 0x1a6   :  { %2292 = vtanh.f32 %v932_v43  ;;  %v837_v3 = vmul.f32 %v805_v30, %v2942_v41 }
 0x1a7   :  { %v1027_v47 = vmul.f32 0.5, %v995_v50  ;;  %v2113_v50 = vld [vmem:[%s3453_s7 + $0x20] sm:$0xf] }
 0x1a8   :  { %v869_v28 = vmul.f32 0.044715, %v837_v3  ;;  %1763 = vmatpush.bf16.msrb.mxu0 %v3004_v34 }
 0x1a9   :  { %v751_v24 = vpop.f32.mrf.mxu1  ;;  %v1059_v10 = vmul.f32 %v1027_v47, %v2932_v33 }
 0x1aa   :  { %v901_v49 = vadd.f32 %v869_v28, %v2942_v41  ;;  %v2950_v7 = vadd.f32 %v2736_v2, %v751_v24 }
 0x1ac   :  { %v2293_v54 = vpop.eup %2292  ;;  %v933_v9 = vmul.f32 0.7978846, %v901_v49  ;;  %v806_v55 = vmul.f32 %v2950_v7, %v2950_v7  ;;  %1764 = vmatpush.bf16.msrb.mxu0 %v3021_v29  ;;  %v2172_v49 = vld [vmem:[%s3453_s7 + $0x24] sm:$0xf0] }
 0x1ad   :  { %v996_v26 = vadd.f32 1.0, %v2293_v54  ;;  %v2114_v45 = vor.u32 %v2172_v49, %v2113_v50 }
 0x1ae   :  { %v838_v58 = vmul.f32 %v806_v55, %v2950_v7  ;;  %2294 = vtanh.f32 %v933_v9  ;;  %v3058_v9 = vor.u32 %v2171_v52, %v2115_v4 }
 0x1af   :  { %v1028_v5 = vmul.f32 0.5, %v996_v26 }
 0x1b0   :  { %v870_v36 = vmul.f32 0.044715, %v838_v58  ;;  %1765 = vmatpush.bf16.msrb.mxu0 %v3042_v31 }
 0x1b1   :  { %v754_v8 = vpop.f32.mrf.mxu1  ;;  %v1060_v12 = vmul.f32 %v1028_v5, %v747_v25  ;;  %v2130_v25 = vor.u32 %v2176_v22, %v2129_v21  ;;  %v2107_v5 = vld [vmem:[%s3453_s7 + $0x18] sm:$0xf0] }
 0x1b2   :  { %v902_v60 = vadd.f32 %v870_v36, %v2950_v7  ;;  %v2988_v14 = vadd.f32 %v2736_v2, %v754_v8  ;;  %v3087_v8 = vld [vmem:[%s3452_s6] ss:$0 sm:$0xff] }
 0x1b3   :  { %v1084_v33 = vpack.c.bf16 %v1060_v12, %v1059_v10  ;;  %1675 = vmatpush.bf16.msrb.mxu3 %v2130_v25 }
 0x1b4   :  { %v934_v19 = vmul.f32 0.7978846, %v902_v60  ;;  %v807_v32 = vmul.f32 %v2988_v14, %v2988_v14  ;;  %v2295_v20 = vpop.eup %2294  ;;  %1766 = vmatpush.bf16.msrb.mxu0 %v3058_v9  ;;  %v2097_v60 = vld [vmem:[%s3453_s7] sm:$0xf] }
 0x1b5   :  { %2086 = vmatmul.msk.bf16.gmra.mxu2 %vm651_vm1, %v1084_v33  ;;  %v997_v59 = vadd.f32 1.0, %v2295_v20  ;;  %v2098_v16 = vor.u32 %v2168_v57, %v2097_v60  ;;  %v2099_v33 = vld [vmem:[%s3453_s7 + $0x8] sm:$0xf0] }
 0x1b6   :  { %2296 = vtanh.f32 %v934_v19  ;;  %v839_v11 = vmul.f32 %v807_v32, %v2988_v14  ;;  %v3103_v19 = vor.u32 %v2167_v15, %v2099_v33 }
 0x1b7   :  { %v1029_v3 = vmul.f32 0.5, %v997_v59  ;;  %1676 = vmatpush.bf16.msrb.mxu3 %v2122_v39 }
 0x1b8   :  { %v871_v27 = vmul.f32 0.044715, %v839_v11 }
 0x1b9   :  { %v756_v18 = vpop.f32.mrf.mxu1  ;;  %v1061_v55 = vmul.f32 %v1029_v3, %v2942_v41  ;;  %v2169_v41 = vld [vmem:[%s3453_s7 + $0x14] sm:$0xf] }
 0x1ba   :  { %v903_v35 = vadd.f32 %v871_v27, %v2988_v14  ;;  %v3025_v51 = vadd.f32 %v2736_v2, %v756_v18  ;;  %v3081_v56 = vor.u32 %v2169_v41, %v2107_v5 }
 0x1bb   :  { %1677 = vmatpush.bf16.msrb.mxu3 %v2114_v45 }
 0x1bc   :  { %v2297_v42 = vpop.eup %2296  ;;  %v935_v43 = vmul.f32 0.7978846, %v903_v35  ;;  %v808_v30 = vmul.f32 %v3025_v51, %v3025_v51  ;;  %1767 = vmatpush.bf16.msrb.mxu0 %v3081_v56 }
 0x1bd   :  { %v998_v28 = vadd.f32 1.0, %v2297_v42 }
 0x1be   :  { %v840_v24 = vmul.f32 %v808_v30, %v3025_v51  ;;  %2298 = vtanh.f32 %v935_v43 }
 0x1bf   :  { %v1030_v53 = vmul.f32 0.5, %v998_v28  ;;  %1678 = vmatpush.bf16.msrb.mxu3 %v2106_v1 }
 0x1c0   :  { %v872_v54 = vmul.f32 0.044715, %v840_v24  ;;  %1768 = vmatpush.bf16.msrb.mxu0 %v3103_v19 }
 0x1c1   :  { %v1062_v48 = vmul.f32 %v1030_v53, %v2950_v7  ;;  %v759_v26 = vpop.f32.mrf.mxu1 }
 0x1c2   :  { %v904_v47 = vadd.f32 %v872_v54, %v3025_v51  ;;  %v3064_v58 = vadd.f32 %v2736_v2, %v759_v26 }
 0x1c3   :  { %v1085_v7 = vpack.c.bf16 %v1062_v48, %v1061_v55  ;;  %1679 = vmatpush.bf16.msrb.mxu3 %v2098_v16 }
 0x1c4   :  { %v936_v44 = vmul.f32 0.7978846, %v904_v47  ;;  %v809_v36 = vmul.f32 %v3064_v58, %v3064_v58  ;;  %v2299_v10 = vpop.eup %2298 }
 0x1c5   :  { %2087 = vmatmul.msk.bf16.gmra.mxu2 %vm651_vm1, %v1085_v7  ;;  %v999_v32 = vadd.f32 1.0, %v2299_v10 }
 0x1c6   :  { %2300 = vtanh.f32 %v936_v44  ;;  %v841_v12 = vmul.f32 %v809_v36, %v3064_v58 }
 0x1c7   :  { %2186 = vmatpush.bf16.msra.mxu3 %v2961_v46  ;;  %v1031_v59 = vmul.f32 0.5, %v999_v32 }
 0x1c8   :  { %v873_v63 = vmul.f32 0.044715, %v841_v12  ;;  %v1186_v17 = vpop.f32.mrf.mxu2 }
 0x1c9   :  { %v3106_v20 = vadd.f32 %v3087_v8, %v1186_v17  ;;  %v761_v11 = vpop.f32.mrf.mxu1  ;;  %v1063_v46 = vmul.f32 %v1031_v59, %v2988_v14 }
 0x1ca   :  { %v905_v21 = vadd.f32 %v873_v63, %v3064_v58  ;;  %v3110_v22 = vadd.f32 %v2736_v2, %v761_v11 }
 0x1cb   :  { %v1266_v23 = vmul.f32 %v3106_v20, %v3106_v20  ;;  %2187 = vmatpush.bf16.msra.mxu3 %v2979_v6 }
 0x1cc   :  { %v2301_v25 = vpop.eup %2300  ;;  %v937_v0 = vmul.f32 0.7978846, %v905_v21  ;;  %v810_v27 = vmul.f32 %v3110_v22, %v3110_v22 }
 0x1cd   :  { %v1000_v18 = vadd.f32 1.0, %v2301_v25  ;;  %v1298_v35 = vmul.f32 %v1266_v23, %v3106_v20 }
 0x1ce   :  { %v842_v13 = vmul.f32 %v810_v27, %v3110_v22  ;;  %2302 = vtanh.f32 %v937_v0 }
 0x1cf   :  { %v1032_v37 = vmul.f32 0.5, %v1000_v18  ;;  %v1330_v38 = vmul.f32 0.044715, %v1298_v35  ;;  %2188 = vmatpush.bf16.msra.mxu3 %v3004_v34 }
 0x1d0   :  { %v874_v39 = vmul.f32 0.044715, %v842_v13  ;;  %v1188_v40 = vpop.f32.mrf.mxu2 }
 0x1d1   :  { %v1064_v42 = vmul.f32 %v1032_v37, %v3025_v51  ;;  %v1362_v43 = vadd.f32 %v1330_v38, %v3106_v20  ;;  %v3125_v30 = vadd.f32 %v3087_v8, %v1188_v40  ;;  %v764_v3 = vpop.f32.mrf.mxu1 }
 0x1d2   :  { %v906_v28 = vadd.f32 %v874_v39, %v3110_v22  ;;  %v3129_v24 = vadd.f32 %v2736_v2, %v764_v3 }
 0x1d3   :  { %v1394_v50 = vmul.f32 0.7978846, %v1362_v43  ;;  %v1267_v6 = vmul.f32 %v3125_v30, %v3125_v30  ;;  %v1086_v49 = vpack.c.bf16 %v1064_v42, %v1063_v46  ;;  %2189 = vmatpush.bf16.msra.mxu3 %v3021_v29 }
 0x1d4   :  { %v938_v14 = vmul.f32 0.7978846, %v906_v28  ;;  %v811_v51 = vmul.f32 %v3129_v24, %v3129_v24  ;;  %v2303_v53 = vpop.eup %2302 }
 0x1d5   :  { %v1299_v52 = vmul.f32 %v1267_v6, %v3125_v30  ;;  %2088 = vmatmul.msk.bf16.gmra.mxu2 %vm651_vm1, %v1086_v49  ;;  %v1001_v55 = vadd.f32 1.0, %v2303_v53 }
 0x1d6   :  { %2304 = vtanh.f32 %v938_v14  ;;  %v843_v2 = vmul.f32 %v811_v51, %v3129_v24 }
 0x1d7   :  { %2306 = vtanh.f32 %v1394_v50  ;;  %v1331_v45 = vmul.f32 0.044715, %v1299_v52  ;;  %2190 = vmatpush.bf16.msra.mxu3 %v3042_v31  ;;  %v1033_v36 = vmul.f32 0.5, %v1001_v55 }
 0x1d8   :  { %v875_v4 = vmul.f32 0.044715, %v843_v2  ;;  %v1191_v54 = vpop.f32.mrf.mxu2 }
 0x1d9   :  { %v1363_v34 = vadd.f32 %v1331_v45, %v3125_v30  ;;  %v3142_v48 = vadd.f32 %v3087_v8, %v1191_v54  ;;  %v766_v26 = vpop.f32.mrf.mxu1  ;;  %v1065_v63 = vmul.f32 %v1033_v36, %v3064_v58 }
 0x1da   :  { %v907_v47 = vadd.f32 %v875_v4, %v3129_v24  ;;  %v3151_v62 = vadd.f32 %v3148_v61, %v766_v26 }
 0x1db   :  { %v1395_v29 = vmul.f32 0.7978846, %v1363_v34  ;;  %v1268_v41 = vmul.f32 %v3142_v48, %v3142_v48  ;;  %2191 = vmatpush.bf16.msra.mxu3 %v3058_v9 }
 0x1dc   :  { %v2305_v7 = vpop.eup %2304  ;;  %v939_v1 = vmul.f32 0.7978846, %v907_v47  ;;  %v812_v5 = vmul.f32 %v3151_v62, %v3151_v62 }
 0x1dd   :  { %v2307_v44 = vpop.eup %2306  ;;  %v1002_v10 = vadd.f32 1.0, %v2305_v7  ;;  %v1300_v12 = vmul.f32 %v1268_v41, %v3142_v48  ;;  %2308 = vtanh.f32 %v1395_v29 }
 0x1de   :  { %v844_v60 = vmul.f32 %v812_v5, %v3151_v62  ;;  %2310 = vtanh.f32 %v939_v1  ;;  %v1458_v33 = vadd.f32 1.0, %v2307_v44 }
 0x1df   :  { %v1034_v57 = vmul.f32 0.5, %v1002_v10  ;;  %v1332_v15 = vmul.f32 0.044715, %v1300_v12  ;;  %2192 = vmatpush.bf16.msra.mxu3 %v3081_v56 }
 0x1e0   :  { %v876_v16 = vmul.f32 0.044715, %v844_v60  ;;  %v1193_v31 = vpop.f32.mrf.mxu2  ;;  %v1490_v35 = vmul.f32 0.5, %v1458_v33 }
 0x1e1   :  { %v1066_v17 = vmul.f32 %v1034_v57, %v3110_v22  ;;  %v1364_v32 = vadd.f32 %v1332_v15, %v3142_v48  ;;  %v3165_v11 = vadd.f32 %v3087_v8, %v1193_v31  ;;  %v769_v21 = vpop.f32.mrf.mxu1 }
 0x1e2   :  { %v908_v23 = vadd.f32 %v876_v16, %v3151_v62  ;;  %v3169_v25 = vadd.f32 %v3148_v61, %v769_v21  ;;  %v1522_v42 = vmul.f32 %v1490_v35, %v3106_v20 }
 0x1e3   :  { %v2309_v9 = vpop.eup %2308  ;;  %v1269_v0 = vmul.f32 %v3165_v11, %v3165_v11  ;;  %v1087_v27 = vpack.c.bf16 %v1066_v17, %v1065_v63  ;;  %v1396_v59 = vmul.f32 0.7978846, %v1364_v32  ;;  %2193 = vmatpush.bf16.msra.mxu3 %v3103_v19 }
 0x1e4   :  { %v940_v58 = vmul.f32 0.7978846, %v908_v23  ;;  %v813_v22 = vmul.f32 %v3169_v25, %v3169_v25  ;;  %v1459_v18 = vadd.f32 1.0, %v2309_v9  ;;  %v2311_v37 = vpop.eup %2310 }
 0x1e5   :  { %v1301_v13 = vmul.f32 %v1269_v0, %v3165_v11  ;;  %2089 = vmatmul.msk.bf16.gmra.mxu2 %vm651_vm1, %v1087_v27  ;;  %v1003_v3 = vadd.f32 1.0, %v2311_v37 }
 0x1e6   :  { %2312 = vtanh.f32 %v940_v58  ;;  %v845_v38 = vmul.f32 %v813_v22, %v3169_v25  ;;  %v1491_v39 = vmul.f32 0.5, %v1459_v18 }
 0x1e7   :  { %v1333_v40 = vmul.f32 0.044715, %v1301_v13  ;;  %2314 = vtanh.f32 %v1396_v59  ;;  %v1035_v45 = vmul.f32 0.5, %v1003_v3 }
 0x1e8   :  { %v877_v56 = vmul.f32 0.044715, %v845_v38  ;;  %v1196_v46 = vpop.f32.mrf.mxu2  ;;  %v1523_v43 = vmul.f32 %v1491_v39, %v3125_v30 }
 0x1e9   :  { %v3183_v28 = vadd.f32 %v3087_v8, %v1196_v46  ;;  %v771_v50 = vpop.f32.mrf.mxu1  ;;  %v1365_v6 = vadd.f32 %v1333_v40, %v3165_v11  ;;  %v1067_v7 = vmul.f32 %v1035_v45, %v3129_v24 }
 0x1ea   :  { %v909_v49 = vadd.f32 %v877_v56, %v3169_v25  ;;  %v3188_v14 = vadd.f32 %v3148_v61, %v771_v50  ;;  %v1554_v51 = vpack.c.bf16 %v1523_v43, %v1522_v42 }
 0x1eb   :  { %v1270_v19 = vmul.f32 %v3183_v28, %v3183_v28  ;;  %v1397_v52 = vmul.f32 0.7978846, %v1365_v6 }
 0x1ec   :  { %v2313_v20 = vpop.eup %2312  ;;  %v941_v53 = vmul.f32 0.7978846, %v909_v49  ;;  %v814_v30 = vmul.f32 %v3188_v14, %v3188_v14  ;;  %1680 = vmatmul.bf16.vlgmr.msrb.gmra.mxu3 %v1554_v51  ;;  %1769 = vmatmul.bf16.vlgmr.msrb.gmra.mxu0 %v1554_v51 }
 0x1ed   :  { %v2315_v2 = vpop.eup %2314  ;;  %v1004_v4 = vadd.f32 1.0, %v2313_v20  ;;  %v1302_v54 = vmul.f32 %v1270_v19, %v3183_v28  ;;  %2316 = vtanh.f32 %v1397_v52 }
 0x1ee   :  { %v846_v55 = vmul.f32 %v814_v30, %v3188_v14  ;;  %2318 = vtanh.f32 %v941_v53  ;;  %v1460_v41 = vadd.f32 1.0, %v2315_v2 }
 0x1ef   :  { %v1036_v34 = vmul.f32 0.5, %v1004_v4  ;;  %v1334_v26 = vmul.f32 0.044715, %v1302_v54 }
 0x1f0   :  { %v878_v47 = vmul.f32 0.044715, %v846_v55  ;;  %v1198_v29 = vpop.f32.mrf.mxu2  ;;  %v1492_v33 = vmul.f32 0.5, %v1460_v41 }
 0x1f1   :  { %v1068_v1 = vmul.f32 %v1036_v34, %v3151_v62  ;;  %v1366_v5 = vadd.f32 %v1334_v26, %v3183_v28  ;;  %v3200_v44 = vadd.f32 %v3087_v8, %v1198_v29  ;;  %v774_v36 = vpop.f32.mrf.mxu1 }
 0x1f2   :  { %v910_v10 = vadd.f32 %v878_v47, %v3188_v14  ;;  %v3204_v12 = vadd.f32 %v3148_v61, %v774_v36  ;;  %v1524_v27 = vmul.f32 %v1492_v33, %v3142_v48 }
 0x1f3   :  { %v2317_v60 = vpop.eup %2316  ;;  %v1271_v57 = vmul.f32 %v3200_v44, %v3200_v44  ;;  %v1088_v15 = vpack.c.bf16 %v1068_v1, %v1067_v7  ;;  %v1398_v16 = vmul.f32 0.7978846, %v1366_v5 }
 0x1f4   :  { %v942_v24 = vmul.f32 0.7978846, %v910_v10  ;;  %v815_v62 = vmul.f32 %v3204_v12, %v3204_v12  ;;  %v1461_v31 = vadd.f32 1.0, %v2317_v60  ;;  %v2319_v17 = vpop.eup %2318 }
 0x1f5   :  { %v1303_v63 = vmul.f32 %v1271_v57, %v3200_v44  ;;  %2090 = vmatmul.msk.bf16.gmra.mxu2 %vm651_vm1, %v1088_v15  ;;  %v1005_v58 = vadd.f32 1.0, %v2319_v17 }
 0x1f6   :  { %2320 = vtanh.f32 %v942_v24  ;;  %v847_v32 = vmul.f32 %v815_v62, %v3204_v12  ;;  %v1493_v21 = vmul.f32 0.5, %v1461_v31 }
 0x1f7   :  { %v1335_v23 = vmul.f32 0.044715, %v1303_v63  ;;  %2322 = vtanh.f32 %v1398_v16  ;;  %v1037_v42 = vmul.f32 0.5, %v1005_v58 }
 0x1f8   :  { %v879_v9 = vmul.f32 0.044715, %v847_v32  ;;  %v1201_v0 = vpop.f32.mrf.mxu2  ;;  %v1525_v59 = vmul.f32 %v1493_v21, %v3165_v11 }
 0x1f9   :  { %v3216_v22 = vadd.f32 %v3087_v8, %v1201_v0  ;;  %v776_v18 = vpop.f32.mrf.mxu1  ;;  %v1367_v35 = vadd.f32 %v1335_v23, %v3200_v44  ;;  %v1069_v20 = vmul.f32 %v1037_v42, %v3169_v25 }
 0x1fa   :  { %v911_v13 = vadd.f32 %v879_v9, %v3204_v12  ;;  %v3221_v37 = vadd.f32 %v3148_v61, %v776_v18  ;;  %v1555_v38 = vpack.c.bf16 %v1525_v59, %v1524_v27 }
 0x1fb   :  { %v1272_v39 = vmul.f32 %v3216_v22, %v3216_v22  ;;  %v1399_v40 = vmul.f32 0.7978846, %v1367_v35 }
 0x1fc   :  { %v2321_v48 = vpop.eup %2320  ;;  %v943_v56 = vmul.f32 0.7978846, %v911_v13  ;;  %v816_v11 = vmul.f32 %v3221_v37, %v3221_v37  ;;  %1685 = vmatmul.bf16.gmra.mxu3 %v1555_v38  ;;  %1774 = vmatmul.bf16.gmra.mxu0 %v1555_v38 }
 0x1fd   :  { %v2323_v46 = vpop.eup %2322  ;;  %v1006_v43 = vadd.f32 1.0, %v2321_v48  ;;  %v1304_v3 = vmul.f32 %v1272_v39, %v3216_v22  ;;  %2324 = vtanh.f32 %v1399_v40 }
 0x1fe   :  { %v848_v50 = vmul.f32 %v816_v11, %v3221_v37  ;;  %2326 = vtanh.f32 %v943_v56  ;;  %v1462_v52 = vadd.f32 1.0, %v2323_v46 }
 0x1ff   :  { %v1038_v6 = vmul.f32 0.5, %v1006_v43  ;;  %v1336_v49 = vmul.f32 0.044715, %v1304_v3 }
 0x200   :  { %v880_v51 = vmul.f32 0.044715, %v848_v50  ;;  %v1203_v19 = vpop.f32.mrf.mxu2  ;;  %v1494_v41 = vmul.f32 0.5, %v1462_v52 }
 0x201   :  { %v1070_v53 = vmul.f32 %v1038_v6, %v3188_v14  ;;  %v1368_v30 = vadd.f32 %v1336_v49, %v3216_v22  ;;  %v3233_v2 = vadd.f32 %v3087_v8, %v1203_v19  ;;  %v779_v45 = vpop.f32.mrf.mxu1 }
 0x202   :  { %v912_v4 = vadd.f32 %v880_v51, %v3221_v37  ;;  %v3237_v54 = vadd.f32 %v3148_v61, %v779_v45  ;;  %v1526_v15 = vmul.f32 %v1494_v41, %v3183_v28 }
 0x203   :  { %v2325_v55 = vpop.eup %2324  ;;  %v1273_v34 = vmul.f32 %v3233_v2, %v3233_v2  ;;  %v1089_v26 = vpack.c.bf16 %v1070_v53, %v1069_v20  ;;  %v1400_v47 = vmul.f32 0.7978846, %v1368_v30 }
 0x204   :  { %v944_v25 = vmul.f32 0.7978846, %v912_v4  ;;  %v817_v14 = vmul.f32 %v3237_v54, %v3237_v54  ;;  %v1463_v29 = vadd.f32 1.0, %v2325_v55  ;;  %v2327_v1 = vpop.eup %2326 }
 0x205   :  { %v1305_v7 = vmul.f32 %v1273_v34, %v3233_v2  ;;  %2091 = vmatmul.msk.bf16.gmra.mxu2 %vm651_vm1, %v1089_v26  ;;  %v1007_v24 = vadd.f32 1.0, %v2327_v1 }
 0x206   :  { %2328 = vtanh.f32 %v944_v25  ;;  %v849_v5 = vmul.f32 %v817_v14, %v3237_v54  ;;  %v1495_v36 = vmul.f32 0.5, %v1463_v29 }
 0x207   :  { %v1337_v10 = vmul.f32 0.044715, %v1305_v7  ;;  %2330 = vtanh.f32 %v1400_v47  ;;  %v1039_v27 = vmul.f32 0.5, %v1007_v24 }
 0x208   :  { %v881_v60 = vmul.f32 0.044715, %v849_v5  ;;  %v1206_v57 = vpop.f32.mrf.mxu2  ;;  %v1527_v16 = vmul.f32 %v1495_v36, %v3200_v44 }
 0x209   :  { %v3249_v62 = vadd.f32 %v3087_v8, %v1206_v57  ;;  %v781_v31 = vpop.f32.mrf.mxu1  ;;  %v1369_v33 = vadd.f32 %v1337_v10, %v3233_v2  ;;  %v1071_v48 = vmul.f32 %v1039_v27, %v3204_v12 }
 0x20a   :  { %v913_v63 = vadd.f32 %v881_v60, %v3237_v54  ;;  %v3254_v17 = vadd.f32 %v3148_v61, %v781_v31  ;;  %v1556_v32 = vpack.c.bf16 %v1527_v16, %v1526_v15 }
 0x20b   :  { %v1274_v21 = vmul.f32 %v3249_v62, %v3249_v62  ;;  %v1401_v23 = vmul.f32 0.7978846, %v1369_v33 }
 0x20c   :  { %v2329_v28 = vpop.eup %2328  ;;  %v945_v9 = vmul.f32 0.7978846, %v913_v63  ;;  %v818_v44 = vmul.f32 %v3254_v17, %v3254_v17  ;;  %1690 = vmatmul.bf16.gmra.mxu3 %v1556_v32  ;;  %1779 = vmatmul.bf16.gmra.mxu0 %v1556_v32 }
 0x20d   :  { %v2331_v0 = vpop.eup %2330  ;;  %v1008_v59 = vadd.f32 1.0, %v2329_v28  ;;  %v1306_v58 = vmul.f32 %v1274_v21, %v3249_v62  ;;  %2332 = vtanh.f32 %v1401_v23 }
 0x20e   :  { %v850_v18 = vmul.f32 %v818_v44, %v3254_v17  ;;  %2334 = vtanh.f32 %v945_v9  ;;  %v1464_v40 = vadd.f32 1.0, %v2331_v0 }
 0x20f   :  { %v1040_v35 = vmul.f32 0.5, %v1008_v59  ;;  %v1338_v13 = vmul.f32 0.044715, %v1306_v58 }
 0x210   :  { %v882_v38 = vmul.f32 0.044715, %v850_v18  ;;  %v1208_v39 = vpop.f32.mrf.mxu2  ;;  %v1496_v52 = vmul.f32 0.5, %v1464_v40 }
 0x211   :  { %v1072_v56 = vmul.f32 %v1040_v35, %v3221_v37  ;;  %v1370_v11 = vadd.f32 %v1338_v13, %v3249_v62  ;;  %v3266_v46 = vadd.f32 %v3087_v8, %v1208_v39  ;;  %v784_v42 = vpop.f32.mrf.mxu1 }
 0x212   :  { %v914_v43 = vadd.f32 %v882_v38, %v3254_v17  ;;  %v3270_v3 = vadd.f32 %v3148_v61, %v784_v42  ;;  %v1528_v26 = vmul.f32 %v1496_v52, %v3216_v22 }
 0x213   :  { %v2333_v50 = vpop.eup %2332  ;;  %v1275_v6 = vmul.f32 %v3266_v46, %v3266_v46  ;;  %v1090_v49 = vpack.c.bf16 %v1072_v56, %v1071_v48  ;;  %v1402_v51 = vmul.f32 0.7978846, %v1370_v11 }
 0x214   :  { %v946_v12 = vmul.f32 0.7978846, %v914_v43  ;;  %v819_v37 = vmul.f32 %v3270_v3, %v3270_v3  ;;  %v1465_v19 = vadd.f32 1.0, %v2333_v50  ;;  %v2335_v53 = vpop.eup %2334 }
 0x215   :  { %v1307_v20 = vmul.f32 %v1275_v6, %v3266_v46  ;;  %2092 = vmatmul.msk.bf16.gmra.mxu2 %vm651_vm1, %v1090_v49  ;;  %v1009_v25 = vadd.f32 1.0, %v2335_v53 }
 0x216   :  { %2336 = vtanh.f32 %v946_v12  ;;  %v851_v30 = vmul.f32 %v819_v37, %v3270_v3  ;;  %v1497_v45 = vmul.f32 0.5, %v1465_v19 }
 0x217   :  { %v1339_v4 = vmul.f32 0.044715, %v1307_v20  ;;  %2338 = vtanh.f32 %v1402_v51  ;;  %v1041_v15 = vmul.f32 0.5, %v1009_v25 }
 0x218   :  { %v883_v55 = vmul.f32 0.044715, %v851_v30  ;;  %v1211_v34 = vpop.f32.mrf.mxu2  ;;  %v1529_v47 = vmul.f32 %v1497_v45, %v3233_v2 }
 0x219   :  { %v1371_v14 = vadd.f32 %v1339_v4, %v3266_v46  ;;  %v3283_v29 = vadd.f32 %v3087_v8, %v1211_v34  ;;  %v786_v41 = vpop.f32.mrf.mxu1  ;;  %v1073_v23 = vmul.f32 %v1041_v15, %v3237_v54 }
 0x21a   :  { %v915_v7 = vadd.f32 %v883_v55, %v3270_v3  ;;  %v787_v1 = vadd.f32 %v3148_v61, %v786_v41  ;;  %v1557_v5 = vpack.c.bf16 %v1529_v47, %v1528_v26 }
 0x21b   :  { %v1276_v36 = vmul.f32 %v3283_v29, %v3283_v29  ;;  %v1403_v10 = vmul.f32 0.7978846, %v1371_v14 }
 0x21c   :  { %v2337_v60 = vpop.eup %2336  ;;  %v947_v22 = vmul.f32 0.7978846, %v915_v7  ;;  %v820_v57 = vmul.f32 %v787_v1, %v787_v1  ;;  %1695 = vmatmul.bf16.gmra.mxu3 %v1557_v5  ;;  %1784 = vmatmul.bf16.gmra.mxu0 %v1557_v5 }
 0x21d   :  { %v2339_v2 = vpop.eup %2338  ;;  %v1010_v16 = vadd.f32 1.0, %v2337_v60  ;;  %v1308_v24 = vmul.f32 %v1276_v36, %v3283_v29  ;;  %2340 = vtanh.f32 %v1403_v10 }
 0x21e   :  { %v852_v31 = vmul.f32 %v820_v57, %v787_v1  ;;  %2342 = vtanh.f32 %v947_v22  ;;  %v1466_v21 = vadd.f32 1.0, %v2339_v2 }
 0x21f   :  { %v1042_v33 = vmul.f32 0.5, %v1010_v16  ;;  %v1340_v63 = vmul.f32 0.044715, %v1308_v24 }
 0x220   :  { %v884_v61 = vmul.f32 0.044715, %v852_v31  ;;  %v1213_v32 = vpop.f32.mrf.mxu2  ;;  %v1498_v38 = vmul.f32 0.5, %v1466_v21 }
 0x221   :  { %v1074_v28 = vmul.f32 %v1042_v33, %v3254_v17  ;;  %v1372_v9 = vadd.f32 %v1340_v63, %v3283_v29  ;;  %v1214_v44 = vadd.f32 %v3087_v8, %v1213_v32 }
 0x222   :  { %v916_v0 = vadd.f32 %v884_v61, %v787_v1  ;;  %v1530_v56 = vmul.f32 %v1498_v38, %v3249_v62 }
 0x223   :  { %v2341_v27 = vpop.eup %2340  ;;  %v1277_v59 = vmul.f32 %v1214_v44, %v1214_v44  ;;  %v1091_v58 = vpack.c.bf16 %v1074_v28, %v1073_v23  ;;  %v1404_v18 = vmul.f32 0.7978846, %v1372_v9 }
 0x224   :  { %v948_v35 = vmul.f32 0.7978846, %v916_v0  ;;  %v1467_v13 = vadd.f32 1.0, %v2341_v27  ;;  %v2343_v40 = vpop.eup %2342 }
 0x225   :  { %v1309_v39 = vmul.f32 %v1277_v59, %v1214_v44  ;;  %2093 = vmatmul.msk.bf16.gmra.mxu2 %vm651_vm1, %v1091_v58  ;;  %v1011_v42 = vadd.f32 1.0, %v2343_v40 }
 0x226   :  { %2344 = vtanh.f32 %v948_v35  ;;  %v1499_v54 = vmul.f32 0.5, %v1467_v13 }
 0x227   :  { %v1341_v48 = vmul.f32 0.044715, %v1309_v39  ;;  %2346 = vtanh.f32 %v1404_v18  ;;  %v1043_v19 = vmul.f32 0.5, %v1011_v42 }
 0x228   :  { %v1216_v17 = vpop.f32.mrf.mxu2  ;;  %v1531_v11 = vmul.f32 %v1499_v54, %v3266_v46 }
 0x229   :  { %v1373_v43 = vadd.f32 %v1341_v48, %v1214_v44  ;;  %v1217_v50 = vadd.f32 %v3087_v8, %v1216_v17  ;;  %v1075_v46 = vmul.f32 %v1043_v19, %v3270_v3 }
 0x22a   :  { %v1558_v6 = vpack.c.bf16 %v1531_v11, %v1530_v56 }
 0x22b   :  { %v1278_v49 = vmul.f32 %v1217_v50, %v1217_v50  ;;  %v1405_v51 = vmul.f32 0.7978846, %v1373_v43 }
 0x22c   :  { %v2345_v12 = vpop.eup %2344  ;;  %1700 = vmatmul.bf16.gmra.mxu3 %v1558_v6  ;;  %1789 = vmatmul.bf16.gmra.mxu0 %v1558_v6 }
 0x22d   :  { %v2347_v37 = vpop.eup %2346  ;;  %v1012_v52 = vadd.f32 1.0, %v2345_v12  ;;  %v1310_v20 = vmul.f32 %v1278_v49, %v1217_v50  ;;  %2348 = vtanh.f32 %v1405_v51 }
 0x22e   :  { %v1468_v45 = vadd.f32 1.0, %v2347_v37 }
 0x22f   :  { %v1044_v53 = vmul.f32 0.5, %v1012_v52  ;;  %v1342_v30 = vmul.f32 0.044715, %v1310_v20 }
 0x230   :  { %v1218_v62 = vpop.f32.mrf.mxu2  ;;  %v1500_v7 = vmul.f32 0.5, %v1468_v45 }
 0x231   :  { %v1076_v4 = vmul.f32 %v1044_v53, %v787_v1  ;;  %v1374_v55 = vadd.f32 %v1342_v30, %v1217_v50  ;;  %v1219_v34 = vadd.f32 %v3087_v8, %v1218_v62 }
 0x232   :  { %v1532_v22 = vmul.f32 %v1500_v7, %v3283_v29 }
 0x233   :  { %v2349_v26 = vpop.eup %2348  ;;  %v1279_v47 = vmul.f32 %v1219_v34, %v1219_v34  ;;  %v1092_v25 = vpack.c.bf16 %v1076_v4, %v1075_v46  ;;  %v1406_v14 = vmul.f32 0.7978846, %v1374_v55 }
 0x234   :  { %v1469_v41 = vadd.f32 1.0, %v2349_v26 }
 0x235   :  { %v1311_v5 = vmul.f32 %v1279_v47, %v1219_v34  ;;  %2094 = vmatmul.msk.bf16.gmra.mxu2 %vm651_vm1, %v1092_v25  ;;  %2350 = vtanh.f32 %v1406_v14 }
 0x236   :  { %v1501_v36 = vmul.f32 0.5, %v1469_v41 }
 0x237   :  { %v1343_v10 = vmul.f32 0.044715, %v1311_v5 }
 0x238   :  { %v1221_v60 = vpop.f32.mrf.mxu2  ;;  %v1533_v3 = vmul.f32 %v1501_v36, %v1214_v44 }
 0x239   :  { %v1375_v1 = vadd.f32 %v1343_v10, %v1219_v34  ;;  %v1222_v57 = vadd.f32 %v3087_v8, %v1221_v60 }
 0x23a   :  { %v1559_v2 = vpack.c.bf16 %v1533_v3, %v1532_v22 }
 0x23b   :  { %v1280_v15 = vmul.f32 %v1222_v57, %v1222_v57  ;;  %v1407_v16 = vmul.f32 0.7978846, %v1375_v1  ;;  %v2351_v24 = vpop.eup %2350 }
 0x23c   :  { %1705 = vmatmul.bf16.gmra.mxu3 %v1559_v2  ;;  %1794 = vmatmul.bf16.gmra.mxu0 %v1559_v2  ;;  %v1470_v61 = vadd.f32 1.0, %v2351_v24 }
 0x23d   :  { %v1312_v31 = vmul.f32 %v1280_v15, %v1222_v57  ;;  %2352 = vtanh.f32 %v1407_v16 }
 0x23e   :  { %v1502_v44 = vmul.f32 0.5, %v1470_v61 }
 0x23f   :  { %v1344_v33 = vmul.f32 0.044715, %v1312_v31 }
 0x240   :  { %v1223_v63 = vpop.f32.mrf.mxu2  ;;  %v1534_v18 = vmul.f32 %v1502_v44, %v1217_v50 }
 0x241   :  { %v1376_v32 = vadd.f32 %v1344_v33, %v1222_v57  ;;  %v1224_v21 = vadd.f32 %v3087_v8, %v1223_v63 }
 0x243   :  { %v2353_v23 = vpop.eup %2352  ;;  %v1281_v29 = vmul.f32 %v1224_v21, %v1224_v21  ;;  %v1408_v28 = vmul.f32 0.7978846, %v1376_v32 }
 0x244   :  { %v1471_v9 = vadd.f32 1.0, %v2353_v23  ;;  %v1586_v23 = vld [vmem:[%s3454_s8] sm:$0x3] }
 0x245   :  { %v1313_v0 = vmul.f32 %v1281_v29, %v1224_v21  ;;  %2354 = vtanh.f32 %v1408_v28 }
 0x246   :  { %v1503_v27 = vmul.f32 0.5, %v1471_v9  ;;  %v3323_v9 = vperm.slane %v1586_v23, 1 }
 0x247   :  { %v1345_v59 = vmul.f32 0.044715, %v1313_v0 }
 0x248   :  { %v1226_v58 = vpop.f32.mrf.mxu2  ;;  %v1535_v35 = vmul.f32 %v1503_v27, %v1219_v34 }
 0x249   :  { %v1377_v13 = vadd.f32 %v1345_v59, %v1224_v21  ;;  %v1227_v38 = vadd.f32 %v3087_v8, %v1226_v58 }
 0x24a   :  { %v1560_v39 = vpack.c.bf16 %v1535_v35, %v1534_v18 }
 0x24b   :  { %v1282_v40 = vmul.f32 %v1227_v38, %v1227_v38  ;;  %v1409_v54 = vmul.f32 0.7978846, %v1377_v13  ;;  %v2355_v48 = vpop.eup %2354 }
 0x24c   :  { %1710 = vmatmul.bf16.gmra.mxu3 %v1560_v39  ;;  %1799 = vmatmul.bf16.gmra.mxu0 %v1560_v39  ;;  %v1472_v42 = vadd.f32 1.0, %v2355_v48  ;;  %v3329_v48 = vperm.slane %v1586_v23, 0 }
 0x24d   :  { %v1314_v17 = vmul.f32 %v1282_v40, %v1227_v38  ;;  %2356 = vtanh.f32 %v1409_v54 }
 0x24e   :  { %v1504_v37 = vmul.f32 0.5, %v1472_v42 }
 0x24f   :  { %v1346_v56 = vmul.f32 0.044715, %v1314_v17 }
 0x250   :  { %v1228_v11 = vpop.f32.mrf.mxu2  ;;  %v1536_v30 = vmul.f32 %v1504_v37, %v1222_v57 }
 0x251   :  { %v1378_v43 = vadd.f32 %v1346_v56, %v1227_v38  ;;  %v1229_v6 = vadd.f32 %v3087_v8, %v1228_v11 }
 0x253   :  { %v2357_v49 = vpop.eup %2356  ;;  %v1283_v50 = vmul.f32 %v1229_v6, %v1229_v6  ;;  %v1410_v51 = vmul.f32 0.7978846, %v1378_v43 }
 0x254   :  { %v1473_v12 = vadd.f32 1.0, %v2357_v49 }
 0x255   :  { %v1315_v19 = vmul.f32 %v1283_v50, %v1229_v6  ;;  %2358 = vtanh.f32 %v1410_v51 }
 0x256   :  { %v1505_v52 = vmul.f32 0.5, %v1473_v12 }
 0x257   :  { %v1347_v20 = vmul.f32 0.044715, %v1315_v19 }
 0x258   :  { %v1231_v53 = vpop.f32.mrf.mxu2  ;;  %v1537_v62 = vmul.f32 %v1505_v52, %v1224_v21 }
 0x259   :  { %v1379_v45 = vadd.f32 %v1347_v20, %v1229_v6  ;;  %v3307_v46 = vadd.f32 %v3087_v8, %v1231_v53 }
 0x25a   :  { %v1561_v4 = vpack.c.bf16 %v1537_v62, %v1536_v30 }
 0x25b   :  { %v1284_v55 = vmul.f32 %v3307_v46, %v3307_v46  ;;  %v1411_v34 = vmul.f32 0.7978846, %v1379_v45  ;;  %v2359_v26 = vpop.eup %2358 }
 0x25c   :  { %1715 = vmatmul.bf16.gmra.mxu3 %v1561_v4  ;;  %1804 = vmatmul.bf16.gmra.mxu0 %v1561_v4  ;;  %v1474_v41 = vadd.f32 1.0, %v2359_v26 }
 0x25d   :  { %v1316_v47 = vmul.f32 %v1284_v55, %v3307_v46  ;;  %2360 = vtanh.f32 %v1411_v34 }
 0x25e   :  { %v1506_v3 = vmul.f32 0.5, %v1474_v41 }
 0x25f   :  { %v1348_v25 = vmul.f32 0.044715, %v1316_v47 }
 0x260   :  { %v1233_v14 = vpop.f32.mrf.mxu2  ;;  %v1538_v16 = vmul.f32 %v1506_v3, %v1227_v38 }
 0x261   :  { %v1380_v7 = vadd.f32 %v1348_v25, %v3307_v46  ;;  %v1234_v5 = vadd.f32 %v3087_v8, %v1233_v14 }
 0x263   :  { %v2361_v36 = vpop.eup %2360  ;;  %v1412_v10 = vmul.f32 0.7978846, %v1380_v7  ;;  %v1285_v60 = vmul.f32 %v1234_v5, %v1234_v5 }
 0x264   :  { %v1475_v22 = vadd.f32 1.0, %v2361_v36 }
 0x265   :  { %v1317_v1 = vmul.f32 %v1285_v60, %v1234_v5  ;;  %2362 = vtanh.f32 %v1412_v10 }
 0x266   :  { %v1507_v57 = vmul.f32 0.5, %v1475_v22 }
 0x267   :  { %v1349_v2 = vmul.f32 0.044715, %v1317_v1 }
 0x268   :  { %v1236_v15 = vpop.f32.mrf.mxu2  ;;  %v1539_v24 = vmul.f32 %v1507_v57, %v1229_v6 }
 0x269   :  { %v1381_v31 = vadd.f32 %v1349_v2, %v1234_v5  ;;  %v3315_v33 = vadd.f32 %v3087_v8, %v1236_v15  ;;  %v1770_v63 = vpop.f32.mrf.mxu0 }
 0x26a   :  { %v1562_v61 = vpack.c.bf16 %v1539_v24, %v1538_v16  ;;  %v1771_v13 = vadd.f32 %v1770_v63, %v3323_v9 }
 0x26b   :  { %v1413_v32 = vmul.f32 0.7978846, %v1381_v31  ;;  %v1286_v21 = vmul.f32 %v3315_v33, %v3315_v33  ;;  %v2363_v29 = vpop.eup %2362 }
 0x26c   :  { %1720 = vmatmul.bf16.gmra.mxu3 %v1562_v61  ;;  %1809 = vmatmul.bf16.gmra.mxu0 %v1562_v61  ;;  %v1476_v59 = vadd.f32 1.0, %v2363_v29 }
 0x26d   :  { %2364 = vtanh.f32 %v1413_v32  ;;  %v1318_v28 = vmul.f32 %v1286_v21, %v3315_v33 }
 0x26e   :  { %v1508_v11 = vmul.f32 0.5, %v1476_v59 }
 0x26f   :  { %v1350_v44 = vmul.f32 0.044715, %v1318_v28  ;;  %v1681_v0 = vpop.f32.mrf.mxu3  ;;  %v3350_v28 = vld [vmem:[%s3452_s6] ss:$0 sm:$0xff]  ;;  %s2418_s6 = smov [#allocation3]  }
 0x270   :  { %v1238_v27 = vpop.f32.mrf.mxu2  ;;  %v1682_v50 = vadd.f32 %v1681_v0, %v3329_v48  ;;  %v1540_v37 = vmul.f32 %v1508_v11, %v3307_v46  ;;  %s1982_s16 = sshll.u32 %s2418_s6, 4  ;;  %s1983_s16 = int_to_ptr.vmem [resolvable:$true] %s1982_s16 }
 0x271   :  { %v1382_v58 = vadd.f32 %v1350_v44, %v3315_v33  ;;  %v1239_v18 = vadd.f32 %v3087_v8, %v1238_v27  ;;  %v1772_v35 = vpop.f32.mrf.mxu0 }
 0x272   :  { %v1773_v38 = vadd.f32 %v1772_v35, %v3323_v9 }
 0x273   :  { %v2365_v39 = vpop.eup %2364  ;;  %v1414_v40 = vmul.f32 0.7978846, %v1382_v58  ;;  %v1287_v54 = vmul.f32 %v1239_v18, %v1239_v18 }
 0x274   :  { %v1869_v17 = vmax.f32 %v1771_v13, %v1773_v38  ;;  %v1477_v56 = vadd.f32 1.0, %v2365_v39 }
 0x275   :  { %v1319_v42 = vmul.f32 %v1287_v54, %v1239_v18  ;;  %2366 = vtanh.f32 %v1414_v40 }
 0x276   :  { %v1509_v43 = vmul.f32 0.5, %v1477_v56 }
 0x277   :  { %v1351_v6 = vmul.f32 0.044715, %v1319_v42  ;;  %v1683_v49 = vpop.f32.mrf.mxu3 }
 0x278   :  { %v1684_v51 = vadd.f32 %v1683_v49, %v3329_v48  ;;  %v1241_v12 = vpop.f32.mrf.mxu2  ;;  %v1541_v19 = vmul.f32 %v1509_v43, %v1234_v5 }
 0x279   :  { %v1383_v52 = vadd.f32 %v1351_v6, %v1239_v18  ;;  %v3335_v20 = vadd.f32 %v3087_v8, %v1241_v12  ;;  %v1775_v53 = vpop.f32.mrf.mxu0 }
 0x27a   :  { %v1854_v30 = vmax.f32 %v1682_v50, %v1684_v51  ;;  %v1776_v62 = vadd.f32 %v1775_v53, %v3323_v9  ;;  %v1563_v45 = vpack.c.bf16 %v1541_v19, %v1540_v37 }
 0x27b   :  { %v1415_v4 = vmul.f32 0.7978846, %v1383_v52  ;;  %v1288_v55 = vmul.f32 %v3335_v20, %v3335_v20  ;;  %v2367_v26 = vpop.eup %2366 }
 0x27c   :  { %v1870_v34 = vmax.f32 %v1869_v17, %v1776_v62  ;;  %1725 = vmatmul.bf16.gmra.mxu3 %v1563_v45  ;;  %1814 = vmatmul.bf16.gmra.mxu0 %v1563_v45  ;;  %v1478_v7 = vadd.f32 1.0, %v2367_v26 }
 0x27d   :  { %2368 = vtanh.f32 %v1415_v4  ;;  %v1320_v46 = vmul.f32 %v1288_v55, %v3335_v20 }
 0x27e   :  { %v1510_v16 = vmul.f32 0.5, %v1478_v7 }
 0x27f   :  { %v1352_v47 = vmul.f32 0.044715, %v1320_v46  ;;  %v1686_v25 = vpop.f32.mrf.mxu3 }
 0x280   :  { %v1687_v14 = vadd.f32 %v1686_v25, %v3329_v48  ;;  %v1243_v41 = vpop.f32.mrf.mxu2 }
 0x281   :  { %v1384_v5 = vadd.f32 %v1352_v47, %v3335_v20  ;;  %v1244_v36 = vadd.f32 %v3087_v8, %v1243_v41  ;;  %v1777_v10 = vpop.f32.mrf.mxu0  ;;  %v1542_v8 = vmul.f32 %v1510_v16, %v3315_v33 }
 0x282   :  { %v1855_v60 = vmax.f32 %v1854_v30, %v1687_v14  ;;  %v1778_v22 = vadd.f32 %v1777_v10, %v3323_v9 }
 0x283   :  { %v2369_v3 = vpop.eup %2368  ;;  %v1416_v1 = vmul.f32 0.7978846, %v1384_v5  ;;  %v1289_v57 = vmul.f32 %v1244_v36, %v1244_v36 }
 0x284   :  { %v1871_v2 = vmax.f32 %v1870_v34, %v1778_v22  ;;  %v1479_v15 = vadd.f32 1.0, %v2369_v3 }
 0x285   :  { %v1321_v24 = vmul.f32 %v1289_v57, %v1244_v36  ;;  %2370 = vtanh.f32 %v1416_v1 }
 0x286   :  { %v1511_v31 = vmul.f32 0.5, %v1479_v15 }
 0x287   :  { %v1353_v63 = vmul.f32 0.044715, %v1321_v24  ;;  %v1688_v61 = vpop.f32.mrf.mxu3 }
 0x288   :  { %v1689_v32 = vadd.f32 %v1688_v61, %v3329_v48  ;;  %v1246_v21 = vpop.f32.mrf.mxu2  ;;  %v1543_v23 = vmul.f32 %v1511_v31, %v1239_v18 }
 0x289   :  { %v1385_v29 = vadd.f32 %v1353_v63, %v1244_v36  ;;  %v3353_v44 = vadd.f32 %v3350_v28, %v1246_v21  ;;  %v1780_v0 = vpop.f32.mrf.mxu0 }
 0x28a   :  { %v1856_v27 = vmax.f32 %v1855_v60, %v1689_v32  ;;  %v1781_v59 = vadd.f32 %v1780_v0, %v3323_v9  ;;  %v1564_v58 = vpack.c.bf16 %v1543_v23, %v1542_v8 }
 0x28b   :  { %v1417_v35 = vmul.f32 0.7978846, %v1385_v29  ;;  %v1290_v13 = vmul.f32 %v3353_v44, %v3353_v44  ;;  %v2371_v18 = vpop.eup %2370 }
 0x28c   :  { %v1872_v33 = vmax.f32 %v1871_v2, %v1781_v59  ;;  %1730 = vmatmul.bf16.gmra.mxu3 %v1564_v58  ;;  %1819 = vmatmul.bf16.gmra.mxu0 %v1564_v58  ;;  %v1480_v56 = vadd.f32 1.0, %v2371_v18 }
 0x28d   :  { %2372 = vtanh.f32 %v1417_v35  ;;  %v1322_v38 = vmul.f32 %v1290_v13, %v3353_v44 }
 0x28e   :  { %v1512_v52 = vmul.f32 0.5, %v1480_v56 }
 0x28f   :  { %v1354_v39 = vmul.f32 0.044715, %v1322_v38  ;;  %v1691_v40 = vpop.f32.mrf.mxu3 }
 0x290   :  { %v1692_v54 = vadd.f32 %v1691_v40, %v3329_v48  ;;  %v1248_v17 = vpop.f32.mrf.mxu2  ;;  %v1544_v34 = vmul.f32 %v1512_v52, %v3335_v20 }
 0x291   :  { %v1386_v11 = vadd.f32 %v1354_v39, %v3353_v44  ;;  %v1249_v42 = vadd.f32 %v3350_v28, %v1248_v17  ;;  %v1782_v43 = vpop.f32.mrf.mxu0 }
 0x292   :  { %v1857_v6 = vmax.f32 %v1856_v27, %v1692_v54  ;;  %v1783_v49 = vadd.f32 %v1782_v43, %v3323_v9 }
 0x293   :  { %v2373_v50 = vpop.eup %2372  ;;  %v1418_v51 = vmul.f32 0.7978846, %v1386_v11  ;;  %v1291_v12 = vmul.f32 %v1249_v42, %v1249_v42 }
 0x294   :  { %v1873_v37 = vmax.f32 %v1872_v33, %v1783_v49  ;;  %v1481_v19 = vadd.f32 1.0, %v2373_v50 }
 0x295   :  { %v1323_v53 = vmul.f32 %v1291_v12, %v1249_v42  ;;  %2374 = vtanh.f32 %v1418_v51 }
 0x296   :  { %v1513_v30 = vmul.f32 0.5, %v1481_v19 }
 0x297   :  { %v1355_v62 = vmul.f32 0.044715, %v1323_v53  ;;  %v1693_v45 = vpop.f32.mrf.mxu3 }
 0x298   :  { %v1694_v4 = vadd.f32 %v1693_v45, %v3329_v48  ;;  %v1251_v55 = vpop.f32.mrf.mxu2  ;;  %v1545_v26 = vmul.f32 %v1513_v30, %v1244_v36 }
 0x299   :  { %v1387_v46 = vadd.f32 %v1355_v62, %v1249_v42  ;;  %v3366_v47 = vadd.f32 %v3350_v28, %v1251_v55  ;;  %v1785_v25 = vpop.f32.mrf.mxu0 }
 0x29a   :  { %v1858_v14 = vmax.f32 %v1857_v6, %v1694_v4  ;;  %v1786_v41 = vadd.f32 %v1785_v25, %v3323_v9  ;;  %v1565_v7 = vpack.c.bf16 %v1545_v26, %v1544_v34 }
 0x29b   :  { %v1419_v5 = vmul.f32 0.7978846, %v1387_v46  ;;  %v1292_v10 = vmul.f32 %v3366_v47, %v3366_v47  ;;  %v2375_v22 = vpop.eup %2374 }
 0x29c   :  { %v1874_v60 = vmax.f32 %v1873_v37, %v1786_v41  ;;  %1735 = vmatmul.bf16.gmra.mxu3 %v1565_v7  ;;  %1824 = vmatmul.bf16.gmra.mxu0 %v1565_v7  ;;  %v1482_v2 = vadd.f32 1.0, %v2375_v22 }
 0x29d   :  { %2376 = vtanh.f32 %v1419_v5  ;;  %v1324_v20 = vmul.f32 %v1292_v10, %v3366_v47 }
 0x29e   :  { %v1514_v29 = vmul.f32 0.5, %v1482_v2 }
 0x29f   :  { %v1356_v36 = vmul.f32 0.044715, %v1324_v20  ;;  %v1696_v3 = vpop.f32.mrf.mxu3 }
 0x2a0   :  { %v1697_v1 = vadd.f32 %v1696_v3, %v3329_v48  ;;  %v1253_v57 = vpop.f32.mrf.mxu2  ;;  %v1546_v33 = vmul.f32 %v1514_v29, %v3353_v44 }
 0x2a1   :  { %v1388_v15 = vadd.f32 %v1356_v36, %v3366_v47  ;;  %v1254_v16 = vadd.f32 %v3350_v28, %v1253_v57  ;;  %v1787_v24 = vpop.f32.mrf.mxu0 }
 0x2a2   :  { %v1859_v31 = vmax.f32 %v1858_v14, %v1697_v1  ;;  %v1788_v63 = vadd.f32 %v1787_v24, %v3323_v9 }
 0x2a3   :  { %v2377_v61 = vpop.eup %2376  ;;  %v1420_v32 = vmul.f32 0.7978846, %v1388_v15  ;;  %v1293_v21 = vmul.f32 %v1254_v16, %v1254_v16 }
 0x2a4   :  { %v1875_v8 = vmax.f32 %v1874_v60, %v1788_v63  ;;  %v1483_v23 = vadd.f32 1.0, %v2377_v61 }
 0x2a5   :  { %v1325_v0 = vmul.f32 %v1293_v21, %v1254_v16  ;;  %2378 = vtanh.f32 %v1420_v32 }
 0x2a6   :  { %v1515_v27 = vmul.f32 0.5, %v1483_v23 }
 0x2a7   :  { %v1357_v59 = vmul.f32 0.044715, %v1325_v0  ;;  %v1698_v58 = vpop.f32.mrf.mxu3 }
 0x2a8   :  { %v1699_v35 = vadd.f32 %v1698_v58, %v3329_v48  ;;  %v1256_v13 = vpop.f32.mrf.mxu2  ;;  %v1547_v18 = vmul.f32 %v1515_v27, %v1249_v42 }
 0x2a9   :  { %v1389_v38 = vadd.f32 %v1357_v59, %v1254_v16  ;;  %v3379_v39 = vadd.f32 %v3350_v28, %v1256_v13  ;;  %v1790_v40 = vpop.f32.mrf.mxu0 }
 0x2aa   :  { %v1860_v54 = vmax.f32 %v1859_v31, %v1699_v35  ;;  %v1791_v17 = vadd.f32 %v1790_v40, %v3323_v9  ;;  %v1566_v56 = vpack.c.bf16 %v1547_v18, %v1546_v33 }
 0x2ab   :  { %v1421_v11 = vmul.f32 0.7978846, %v1389_v38  ;;  %v1294_v43 = vmul.f32 %v3379_v39, %v3379_v39  ;;  %v2379_v49 = vpop.eup %2378 }
 0x2ac   :  { %v1876_v6 = vmax.f32 %v1875_v8, %v1791_v17  ;;  %1740 = vmatmul.bf16.gmra.mxu3 %v1566_v56  ;;  %1829 = vmatmul.bf16.gmra.mxu0 %v1566_v56  ;;  %v1484_v37 = vadd.f32 1.0, %v2379_v49 }
 0x2ad   :  { %2380 = vtanh.f32 %v1421_v11  ;;  %v1326_v44 = vmul.f32 %v1294_v43, %v3379_v39 }
 0x2ae   :  { %v1516_v46 = vmul.f32 0.5, %v1484_v37 }
 0x2af   :  { %v1358_v42 = vmul.f32 0.044715, %v1326_v44  ;;  %v1701_v50 = vpop.f32.mrf.mxu3 }
 0x2b0   :  { %v1702_v51 = vadd.f32 %v1701_v50, %v3329_v48  ;;  %v1258_v12 = vpop.f32.mrf.mxu2  ;;  %v1548_v60 = vmul.f32 %v1516_v46, %v3366_v47 }
 0x2b1   :  { %v1390_v19 = vadd.f32 %v1358_v42, %v3379_v39  ;;  %v1259_v52 = vadd.f32 %v3350_v28, %v1258_v12  ;;  %v1792_v53 = vpop.f32.mrf.mxu0 }
 0x2b2   :  { %v1861_v30 = vmax.f32 %v1860_v54, %v1702_v51  ;;  %v1793_v62 = vadd.f32 %v1792_v53, %v3323_v9 }
 0x2b3   :  { %v2381_v45 = vpop.eup %2380  ;;  %v1422_v4 = vmul.f32 0.7978846, %v1390_v19  ;;  %v1295_v55 = vmul.f32 %v1259_v52, %v1259_v52 }
 0x2b4   :  { %v1877_v34 = vmax.f32 %v1876_v6, %v1793_v62  ;;  %v1485_v26 = vadd.f32 1.0, %v2381_v45 }
 0x2b5   :  { %v1327_v25 = vmul.f32 %v1295_v55, %v1259_v52  ;;  %2382 = vtanh.f32 %v1422_v4 }
 0x2b6   :  { %v1517_v14 = vmul.f32 0.5, %v1485_v26 }
 0x2b7   :  { %v1359_v41 = vmul.f32 0.044715, %v1327_v25  ;;  %v1703_v7 = vpop.f32.mrf.mxu3 }
 0x2b8   :  { %v1704_v5 = vadd.f32 %v1703_v7, %v3329_v48  ;;  %v1261_v10 = vpop.f32.mrf.mxu2  ;;  %v1549_v22 = vmul.f32 %v1517_v14, %v1254_v16 }
 0x2b9   :  { %v1391_v20 = vadd.f32 %v1359_v41, %v1259_v52  ;;  %v1262_v36 = vadd.f32 %v3350_v28, %v1261_v10  ;;  %v1795_v3 = vpop.f32.mrf.mxu0 }
 0x2ba   :  { %v1862_v1 = vmax.f32 %v1861_v30, %v1704_v5  ;;  %v1796_v57 = vadd.f32 %v1795_v3, %v3323_v9  ;;  %v1567_v2 = vpack.c.bf16 %v1549_v22, %v1548_v60 }
 0x2bb   :  { %v1423_v15 = vmul.f32 0.7978846, %v1391_v20  ;;  %v1296_v24 = vmul.f32 %v1262_v36, %v1262_v36  ;;  %v2383_v63 = vpop.eup %2382 }
 0x2bc   :  { %v1878_v31 = vmax.f32 %v1877_v34, %v1796_v57  ;;  %1745 = vmatmul.bf16.gmra.mxu3 %v1567_v2  ;;  %1834 = vmatmul.bf16.gmra.mxu0 %v1567_v2  ;;  %v1486_v8 = vadd.f32 1.0, %v2383_v63 }
 0x2bd   :  { %2384 = vtanh.f32 %v1423_v15  ;;  %v1328_v61 = vmul.f32 %v1296_v24, %v1262_v36 }
 0x2be   :  { %v1518_v38 = vmul.f32 0.5, %v1486_v8 }
 0x2bf   :  { %v1360_v32 = vmul.f32 0.044715, %v1328_v61  ;;  %v1706_v21 = vpop.f32.mrf.mxu3 }
 0x2c0   :  { %v1707_v47 = vadd.f32 %v1706_v21, %v3329_v48  ;;  %v1263_v16 = vpop.f32.mrf.mxu2  ;;  %v1550_v43 = vmul.f32 %v1518_v38, %v3379_v39 }
 0x2c1   :  { %v1392_v23 = vadd.f32 %v1360_v32, %v1262_v36  ;;  %v1264_v29 = vadd.f32 %v3350_v28, %v1263_v16  ;;  %v1797_v0 = vpop.f32.mrf.mxu0 }
 0x2c2   :  { %v1863_v27 = vmax.f32 %v1862_v1, %v1707_v47  ;;  %v1798_v59 = vadd.f32 %v1797_v0, %v3323_v9 }
 0x2c3   :  { %v2385_v58 = vpop.eup %2384  ;;  %v1424_v35 = vmul.f32 0.7978846, %v1392_v23  ;;  %v1297_v13 = vmul.f32 %v1264_v29, %v1264_v29 }
 0x2c4   :  { %v1879_v33 = vmax.f32 %v1878_v31, %v1798_v59  ;;  %v1487_v18 = vadd.f32 1.0, %v2385_v58 }
 0x2c5   :  { %v1329_v40 = vmul.f32 %v1297_v13, %v1264_v29  ;;  %2386 = vtanh.f32 %v1424_v35 }
 0x2c6   :  { %v1519_v54 = vmul.f32 0.5, %v1487_v18 }
 0x2c7   :  { %v1361_v17 = vmul.f32 0.044715, %v1329_v40  ;;  %v1708_v56 = vpop.f32.mrf.mxu3 }
 0x2c8   :  { %v1709_v11 = vadd.f32 %v1708_v56, %v3329_v48  ;;  %v1551_v28 = vmul.f32 %v1519_v54, %v1259_v52 }
 0x2c9   :  { %v1393_v6 = vadd.f32 %v1361_v17, %v1264_v29  ;;  %v1800_v49 = vpop.f32.mrf.mxu0 }
 0x2ca   :  { %v1864_v44 = vmax.f32 %v1863_v27, %v1709_v11  ;;  %v1801_v42 = vadd.f32 %v1800_v49, %v3323_v9  ;;  %v1568_v50 = vpack.c.bf16 %v1551_v28, %v1550_v43 }
 0x2cb   :  { %v1425_v51 = vmul.f32 0.7978846, %v1393_v6  ;;  %v2387_v37 = vpop.eup %2386 }
 0x2cc   :  { %v1880_v12 = vmax.f32 %v1879_v33, %v1801_v42  ;;  %1750 = vmatmul.bf16.gmra.mxu3 %v1568_v50  ;;  %1839 = vmatmul.bf16.gmra.mxu0 %v1568_v50  ;;  %v1488_v30 = vadd.f32 1.0, %v2387_v37 }
 0x2cd   :  { %2388 = vtanh.f32 %v1425_v51 }
 0x2ce   :  { %v1520_v34 = vmul.f32 0.5, %v1488_v30 }
 0x2cf   :  { %v1711_v19 = vpop.f32.mrf.mxu3 }
 0x2d0   :  { %v1712_v53 = vadd.f32 %v1711_v19, %v3329_v48  ;;  %v1552_v14 = vmul.f32 %v1520_v34, %v1262_v36 }
 0x2d1   :  { %v1802_v62 = vpop.f32.mrf.mxu0 }
 0x2d2   :  { %v1865_v45 = vmax.f32 %v1864_v44, %v1712_v53  ;;  %v1803_v39 = vadd.f32 %v1802_v62, %v3323_v9 }
 0x2d3   :  { %v2389_v52 = vpop.eup %2388 }
 0x2d4   :  { %v1881_v4 = vmax.f32 %v1880_v12, %v1803_v39  ;;  %v1489_v55 = vadd.f32 1.0, %v2389_v52 }
 0x2d6   :  { %v1521_v26 = vmul.f32 0.5, %v1489_v55 }
 0x2d7   :  { %v1713_v46 = vpop.f32.mrf.mxu3 }
 0x2d8   :  { %v1714_v25 = vadd.f32 %v1713_v46, %v3329_v48  ;;  %v1553_v41 = vmul.f32 %v1521_v26, %v1264_v29 }
 0x2d9   :  { %v1805_v7 = vpop.f32.mrf.mxu0 }
 0x2da   :  { %v1866_v5 = vmax.f32 %v1865_v45, %v1714_v25  ;;  %v1806_v10 = vadd.f32 %v1805_v7, %v3323_v9  ;;  %v1569_v60 = vpack.c.bf16 %v1553_v41, %v1552_v14 }
 0x2dc   :  { %v1882_v22 = vmax.f32 %v1881_v4, %v1806_v10  ;;  %1755 = vmatmul.bf16.gmra.mxu3 %v1569_v60 }
 0x2df   :  { %v1716_v20 = vpop.f32.mrf.mxu3 }
 0x2e0   :  { %v1717_v3 = vadd.f32 %v1716_v20, %v3329_v48 }
 0x2e1   :  { %v1807_v1 = vpop.f32.mrf.mxu0 }
 0x2e2   :  { %v1867_v57 = vmax.f32 %v1866_v5, %v1717_v3  ;;  %v1808_v2 = vadd.f32 %v1807_v1, %v3323_v9 }
 0x2e4   :  { %v1883_v15 = vmax.f32 %v1882_v22, %v1808_v2 }
 0x2e6   :  { %v1935_v24 = vrot.slane %v1883_v15, 4 }
 0x2e7   :  { %v1718_v31 = vpop.f32.mrf.mxu3 }
 0x2e8   :  { %v1936_v63 = vmax.f32 %v1883_v15, %v1935_v24  ;;  %v1719_v36 = vadd.f32 %v1718_v31, %v3329_v48 }
 0x2e9   :  { %v1810_v61 = vpop.f32.mrf.mxu0 }
 0x2ea   :  { %v1937_v32 = vrot.slane %v1936_v63, 2  ;;  %v1868_v21 = vmax.f32 %v1867_v57, %v1719_v36  ;;  %v1811_v35 = vadd.f32 %v1810_v61, %v3323_v9 }
 0x2ec   :  { %v1938_v47 = vmax.f32 %v1936_v63, %v1937_v32  ;;  %v1929_v16 = vrot.slane %v1868_v21, 4  ;;  %1844 = vmatmul.bf16.vlgmr.msra.gmra.mxu3 %v1569_v60 }
 0x2ee   :  { %v1939_v8 = vrot.slane %v1938_v47, 1  ;;  %v1930_v23 = vmax.f32 %v1868_v21, %v1929_v16 }
 0x2ef   :  { %v1721_v29 = vpop.f32.mrf.mxu3 }
 0x2f0   :  { %v1931_v0 = vrot.slane %v1930_v23, 2  ;;  %v1940_v59 = vmax.f32 %v1938_v47, %v1939_v8  ;;  %v1722_v17 = vadd.f32 %v1721_v29, %v3329_v48 }
 0x2f1   :  { %v1812_v27 = vpop.f32.mrf.mxu0 }
 0x2f2   :  { %v1932_v58 = vmax.f32 %v1930_v23, %v1931_v0  ;;  %v1813_v13 = vadd.f32 %v1812_v27, %v3323_v9  ;;  %v1957_v38 = vrot.slane %v1940_v59, 6 }
 0x2f4   :  { %v1933_v33 = vrot.slane %v1932_v58, 1  ;;  %v1899_v18 = vmax.f32 %v1811_v35, %v1813_v13 }
 0x2f6   :  { %v1934_v40 = vmax.f32 %v1932_v58, %v1933_v33 }
 0x2f7   :  { %v1723_v54 = vpop.f32.mrf.mxu3 }
 0x2f8   :  { %v1724_v56 = vadd.f32 %v1723_v54, %v3329_v48  ;;  %v3411_v11 = vsel %vm1959_vm2, %v1934_v40, %v1957_v38 }
 0x2f9   :  { %v1815_v43 = vpop.f32.mrf.mxu0 }
 0x2fa   :  { %v1884_v28 = vmax.f32 %v1722_v17, %v1724_v56  ;;  %v1816_v6 = vadd.f32 %v1815_v43, %v3323_v9 }
 0x2fc   :  { %v1900_v49 = vmax.f32 %v1899_v18, %v1816_v6 }
 0x2ff   :  { %v1726_v44 = vpop.f32.mrf.mxu3 }
 0x300   :  { %v1727_v42 = vadd.f32 %v1726_v44, %v3329_v48 }
 0x301   :  { %v1817_v19 = vpop.f32.mrf.mxu0 }
 0x302   :  { %v1885_v50 = vmax.f32 %v1884_v28, %v1727_v42  ;;  %v1818_v31 = vadd.f32 %v1817_v19, %v3323_v9 }
 0x304   :  { %v1901_v21 = vmax.f32 %v1900_v49, %v1818_v31 }
 0x307   :  { %v1728_v51 = vpop.f32.mrf.mxu3 }
 0x308   :  { %v1729_v12 = vadd.f32 %v1728_v51, %v3329_v48 }
 0x309   :  { %v1820_v45 = vpop.f32.mrf.mxu0 }
 0x30a   :  { %v1886_v37 = vmax.f32 %v1885_v50, %v1729_v12  ;;  %v1821_v61 = vadd.f32 %v1820_v45, %v3323_v9 }
 0x30c   :  { %v1902_v23 = vmax.f32 %v1901_v21, %v1821_v61 }
 0x30f   :  { %v1731_v53 = vpop.f32.mrf.mxu3 }
 0x310   :  { %v1732_v30 = vadd.f32 %v1731_v53, %v3329_v48 }
 0x311   :  { %v1822_v55 = vpop.f32.mrf.mxu0 }
 0x312   :  { %v1887_v62 = vmax.f32 %v1886_v37, %v1732_v30  ;;  %v1823_v47 = vadd.f32 %v1822_v55, %v3323_v9 }
 0x314   :  { %v1903_v58 = vmax.f32 %v1902_v23, %v1823_v47 }
 0x317   :  { %v1733_v39 = vpop.f32.mrf.mxu3 }
 0x318   :  { %v1734_v52 = vadd.f32 %v1733_v39, %v3329_v48 }
 0x319   :  { %v1825_v41 = vpop.f32.mrf.mxu0 }
 0x31a   :  { %v1888_v4 = vmax.f32 %v1887_v62, %v1734_v52  ;;  %v1826_v29 = vadd.f32 %v1825_v41, %v3323_v9 }
 0x31c   :  { %v1904_v38 = vmax.f32 %v1903_v58, %v1826_v29 }
 0x31f   :  { %v1736_v34 = vpop.f32.mrf.mxu3 }
 0x320   :  { %v1737_v26 = vadd.f32 %v1736_v34, %v3329_v48 }
 0x321   :  { %v1827_v10 = vpop.f32.mrf.mxu0 }
 0x322   :  { %v1889_v46 = vmax.f32 %v1888_v4, %v1737_v26  ;;  %v1828_v35 = vadd.f32 %v1827_v10, %v3323_v9 }
 0x324   :  { %v1905_v56 = vmax.f32 %v1904_v38, %v1828_v35 }
 0x327   :  { %v1738_v25 = vpop.f32.mrf.mxu3 }
 0x328   :  { %v1739_v14 = vadd.f32 %v1738_v25, %v3329_v48 }
 0x329   :  { %v1830_v22 = vpop.f32.mrf.mxu0 }
 0x32a   :  { %v1890_v7 = vmax.f32 %v1889_v46, %v1739_v14  ;;  %v1831_v40 = vadd.f32 %v1830_v22, %v3323_v9 }
 0x32c   :  { %v1906_v49 = vmax.f32 %v1905_v56, %v1831_v40 }
 0x32f   :  { %v1741_v5 = vpop.f32.mrf.mxu3 }
 0x330   :  { %v1742_v63 = vadd.f32 %v1741_v5, %v3329_v48 }
 0x331   :  { %v1832_v3 = vpop.f32.mrf.mxu0 }
 0x332   :  { %v1891_v16 = vmax.f32 %v1890_v7, %v1742_v63  ;;  %v1833_v43 = vadd.f32 %v1832_v3, %v3323_v9 }
 0x334   :  { %v1907_v51 = vmax.f32 %v1906_v49, %v1833_v43 }
 0x337   :  { %v1743_v60 = vpop.f32.mrf.mxu3 }
 0x338   :  { %v1744_v32 = vadd.f32 %v1743_v60, %v3329_v48 }
 0x339   :  { %v1835_v2 = vpop.f32.mrf.mxu0 }
 0x33a   :  { %v1892_v0 = vmax.f32 %v1891_v16, %v1744_v32  ;;  %v1836_v44 = vadd.f32 %v1835_v2, %v3323_v9 }
 0x33c   :  { %v1908_v30 = vmax.f32 %v1907_v51, %v1836_v44 }
 0x33f   :  { %v1746_v20 = vpop.f32.mrf.mxu3 }
 0x340   :  { %v1747_v8 = vadd.f32 %v1746_v20, %v3329_v48 }
 0x341   :  { %v1837_v24 = vpop.f32.mrf.mxu0 }
 0x342   :  { %v1893_v13 = vmax.f32 %v1892_v0, %v1747_v8  ;;  %v1838_v12 = vadd.f32 %v1837_v24, %v3323_v9 }
 0x344   :  { %v1909_v39 = vmax.f32 %v1908_v30, %v1838_v12 }
 0x347   :  { %v1748_v1 = vpop.f32.mrf.mxu3 }
 0x348   :  { %v1749_v27 = vadd.f32 %v1748_v1, %v3329_v48 }
 0x349   :  { %v1840_v59 = vpop.f32.mrf.mxu0 }
 0x34a   :  { %v1894_v54 = vmax.f32 %v1893_v13, %v1749_v27  ;;  %v1841_v62 = vadd.f32 %v1840_v59, %v3323_v9 }
 0x34c   :  { %v1910_v4 = vmax.f32 %v1909_v39, %v1841_v62 }
 0x34f   :  { %v1751_v57 = vpop.f32.mrf.mxu3 }
 0x350   :  { %v1752_v33 = vadd.f32 %v1751_v57, %v3329_v48 }
 0x351   :  { %v1842_v19 = vpop.f32.mrf.mxu0 }
 0x352   :  { %v1895_v28 = vmax.f32 %v1894_v54, %v1752_v33  ;;  %v1843_v52 = vadd.f32 %v1842_v19, %v3323_v9 }
 0x354   :  { %v1911_v26 = vmax.f32 %v1910_v4, %v1843_v52 }
 0x357   :  { %v1753_v15 = vpop.f32.mrf.mxu3 }
 0x358   :  { %v1754_v17 = vadd.f32 %v1753_v15, %v3329_v48 }
 0x35a   :  { %v1896_v42 = vmax.f32 %v1895_v28, %v1754_v17 }
 0x35f   :  { %v1756_v36 = vpop.f32.mrf.mxu3 }
 0x360   :  { %v1757_v6 = vadd.f32 %v1756_v36, %v3329_v48 }
 0x362   :  { %v1897_v37 = vmax.f32 %v1896_v42, %v1757_v6 }
 0x367   :  { %v1758_v18 = vpop.f32.mrf.mxu3 }
 0x368   :  { %v1759_v50 = vadd.f32 %v1758_v18, %v3329_v48 }
 0x36a   :  { %v1898_v45 = vmax.f32 %v1897_v37, %v1759_v50 }
 0x36c   :  { %v1941_v55 = vrot.slane %v1898_v45, 4 }
 0x36e   :  { %v1942_v48 = vmax.f32 %v1898_v45, %v1941_v55 }
 0x36f   :  { %v1845_v53 = vpop.f32.mrf.mxu3 }
 0x370   :  { %v1846_v34 = vadd.f32 %v1845_v53, %v3323_v9  ;;  %v1943_v7 = vrot.slane %v1942_v48, 2 }
 0x372   :  { %v1912_v25 = vmax.f32 %v1911_v26, %v1846_v34  ;;  %v1944_v60 = vmax.f32 %v1942_v48, %v1943_v7 }
 0x374   :  { %v1945_v3 = vrot.slane %v1944_v60, 1 }
 0x376   :  { %v1946_v2 = vmax.f32 %v1944_v60, %v1945_v3 }
 0x377   :  { %v1847_v46 = vpop.f32.mrf.mxu3 }
 0x378   :  { %v1848_v14 = vadd.f32 %v1847_v46, %v3323_v9 }
 0x37a   :  { %v1913_v41 = vmax.f32 %v1912_v25, %v1848_v14 }
 0x37c   :  { %v1947_v5 = vrot.slane %v1913_v41, 4 }
 0x37e   :  { %v1948_v10 = vmax.f32 %v1913_v41, %v1947_v5 }
 0x380   :  { %v1949_v22 = vrot.slane %v1948_v10, 2 }
 0x382   :  { %v1950_v20 = vmax.f32 %v1948_v10, %v1949_v22 }
 0x384   :  { %v1951_v1 = vrot.slane %v1950_v20, 1 }
 0x386   :  { %v1952_v57 = vmax.f32 %v1950_v20, %v1951_v1 }
 0x388   :  { %v1958_v15 = vrot.slane %v1952_v57, 6 }
 0x38a   :  { %v1961_v24 = vsel %vm1959_vm2, %v1946_v2, %v1958_v15 }
 0x38b   :  { %v1966_v31 = vrot.slane %v1961_v24, 7 }
 0x38d   :  { %v1968_v9 = vsel %vm1967_vm3, %v1966_v31, %v3411_v11 }
 0x38e   :  { %v1970_v63 = vsel %vm1969_vm4, %v1966_v31, %v1968_v9 }
 0x38f   :  { %v1972_v36 = vsel %vm1971_vm5, %v1966_v31, %v1970_v63 }
 0x390   :  { %v1974_v61 = vsel %vm1973_vm6, %v1966_v31, %v1972_v36 }
 0x391   :  { %1976 = vst [vmem:[#allocation3] sm:$0xf] %v1974_v61 }
 0x392   :  { %1987 = dma.vmem_to_hbm [thread:$0]  %s1983_s16, 64, %s1985_s19, [#allocation4]  }
 0x393   :  { %2416 = dma.done.wait [#allocation4], 64  }
 0x394   :  { %2417 = vsyncadd [#allocation4], 4294967232 }
 0x395   :  { %1992 = vsyncpa [#allocation4], 1 }

</bundles_post_ra>
